<compile_context>
chip_gen: v5e
topology: v5e:2x2
jax: 0.10.0
libtpu: 0.0.40
codegen_flags: <defaults>
</compile_context>

<pallas_src>
import functools

import jax
import jax.numpy as jnp
from jax import lax
from jax.experimental import pallas as pl
from jax.experimental.pallas import tpu as pltpu


def _round_up(x, m):
    return (x + m - 1) // m * m


# Torch gate order in the weight rows is (i, f, g, o); we pack as (i, f, o, g)
# so the three sigmoid gates form one contiguous 3*Hp lane slab.
_GATE_ORDER = (0, 1, 3, 2)


# -----------------------------------------------------------------------------
# Kernel 1: LSTM recurrence (input projection hoisted, loop fully unrolled).
# -----------------------------------------------------------------------------
def lstm_kernel(x_ref, w_ih_ref, w_hh_ref, b_ref, h_out_ref, gx_ref, *,
                hidden_pad, seq_len, batch_pad):
    """x_ref    : (T*Bp, Hp)   bf16, time-major, batch padded to Bp
       w_ih_ref : (Hp, 4*Hp)   bf16, gate blocks [i|f|o|g], each Hp lanes wide
       w_hh_ref : (Hp, 4*Hp)   bf16
       b_ref    : (1, 4*Hp)    f32 (b_ih + b_hh, padded lanes zero)
       h_out_ref: (Bp, Hp)     bf16, last hidden state
       gx_ref   : (T*Bp, 4*Hp) f32 VMEM scratch (hoisted input projection)
    """
    Hp, Bp, T = hidden_pad, batch_pad, seq_len
    mm_dtype = w_ih_ref.dtype

    # Phase 1: input projection for ALL timesteps as one MXU matmul with the
    # bias folded in, written to VMEM scratch (flat vreg pressure vs T*B).
    gx_ref[...] = (jnp.dot(x_ref[...], w_ih_ref[...],
                           preferred_element_type=jnp.float32)
                   + b_ref[...])

    w_hh = w_hh_ref[...]
    h = jnp.zeros((Bp, Hp), jnp.float32)
    c = jnp.zeros((Bp, Hp), jnp.float32)

    # Phase 2: recurrence. T is small and static -> fully unrolled so the
    # scheduler can overlap the W_hh matmul / EUP / VPU work across steps.
    # h and c stay in vregs; gates_x is re-loaded one (Bp, 4Hp) slab per step.
    # (W_hh staying staged in the MXU across steps is left to Mosaic — see
    #  pltpu.matmul_push_rhs if a bundle dump shows per-step re-pushes.)
    for t in range(T):
        gates = gx_ref[t * Bp:(t + 1) * Bp, :] + jnp.dot(
            h.astype(mm_dtype), w_hh, preferred_element_type=jnp.float32)
        # Packed gate order i, f, o, g: one contiguous sigmoid slab + one tanh.
        sig = jax.nn.sigmoid(gates[:, :3 * Hp])
        i_g = sig[:, 0 * Hp:1 * Hp]
        f_g = sig[:, 1 * Hp:2 * Hp]
        o_g = sig[:, 2 * Hp:3 * Hp]
        g_g = jnp.tanh(gates[:, 3 * Hp:4 * Hp])
        c = f_g * c + i_g * g_g
        h = o_g * jnp.tanh(c)

    h_out_ref[...] = h.astype(h_out_ref.dtype)


# -----------------------------------------------------------------------------
# Kernel 2: final FC, gridded over output columns (streams W_fc in N-strips).
# -----------------------------------------------------------------------------
def fc_kernel(h_ref, w_fc_ref, b_fc_ref, out_ref):
    out_ref[...] = (jnp.dot(h_ref[...], w_fc_ref[...],
                            preferred_element_type=jnp.float32)
                    + b_fc_ref[...])


def _pick_fc_tile(Np, max_tile=2048):
    """Largest lane-aligned divisor of Np up to max_tile, preferring >= 2
    strips so the 'parallel' FC grid still splits across v7x's 2 TCs."""
    divisors = [d for d in range(128, min(Np, max_tile) + 1, 128)
                if Np % d == 0]
    if not divisors:
        return Np
    multi = [d for d in divisors if Np // d >= 2]
    return max(multi) if multi else max(divisors)


# -----------------------------------------------------------------------------
# Wrapper = LSTMModel.forward(item_ids) for item_ids of shape (B, T).
# -----------------------------------------------------------------------------
@jax.jit
def lstm_model_forward(item_ids, params):
    emb_table = params["embedding"]   # (n_items, H)
    w_ih, w_hh = params["w_ih"], params["w_hh"]   # (4H, H) torch layout, i,f,g,o
    b_ih, b_hh = params["b_ih"], params["b_hh"]   # (4H,)
    w_fc, b_fc = params["w_fc"], params["b_fc"]   # (N, H), (N,)

    B, T = item_ids.shape
    n_items, H = emb_table.shape
    N = w_fc.shape[0]

    Bp = _round_up(max(B, 8), 8)      # sublane-aligned batch
    Hp = _round_up(H, 128)            # lane-aligned hidden
    Np = _round_up(N, 128)            # lane-aligned output
    mm_dtype = jnp.bfloat16           # MXU operand dtype (f32 accumulation)

    # ---- one-time parameter packing (constant-folded under jit) -------------
    emb_p = jnp.zeros((n_items, Hp), mm_dtype).at[:, :H].set(
        emb_table.astype(mm_dtype))

    def pack_gates(w):  # (4H, H) -> (Hp, 4Hp), gate blocks reordered to i,f,o,g
        w_t = jnp.asarray(w, jnp.float32).T      # (H, 4H)
        out = jnp.zeros((Hp, 4 * Hp), mm_dtype)
        for k, src in enumerate(_GATE_ORDER):
            out = out.at[:H, k * Hp:k * Hp + H].set(
                w_t[:, src * H:(src + 1) * H].astype(mm_dtype))
        return out

    w_ih_p = pack_gates(w_ih)
    w_hh_p = pack_gates(w_hh)

    b = (b_ih + b_hh).astype(jnp.float32)
    b_p = jnp.zeros((1, 4 * Hp), jnp.float32)
    for k, src in enumerate(_GATE_ORDER):
        b_p = b_p.at[0, k * Hp:k * Hp + H].set(b[src * H:(src + 1) * H])

    w_fc_p = jnp.zeros((Hp, Np), mm_dtype).at[:H, :N].set(
        jnp.asarray(w_fc, jnp.float32).T.astype(mm_dtype))
    b_fc_p = jnp.zeros((1, Np), jnp.float32).at[0, :N].set(
        b_fc.astype(jnp.float32))

    # ---- embedding gather, directly time-major + padded + bf16 -------------
    ids_p = jnp.zeros((Bp, T), item_ids.dtype).at[:B].set(item_ids)
    x = jnp.take(emb_p, ids_p.T, axis=0)          # (T, Bp, Hp) bf16
    x = x.reshape(T * Bp, Hp)                     # (T*Bp, Hp)

    vmem = pl.BlockSpec(memory_space=pltpu.MemorySpace.VMEM)

    # ---- LSTM recurrence kernel (everything small; whole-array VMEM) -------
    lstm_vmem_bytes = (T * Bp * Hp * 2            # x
                       + 2 * Hp * 4 * Hp * 2      # W_ih, W_hh
                       + 4 * Hp * 4               # bias
                       + Bp * Hp * 2              # h_out
                       + T * Bp * 4 * Hp * 4)     # gates_x scratch
    lstm_vmem_limit = min(64 << 20, max(2 * lstm_vmem_bytes, 8 << 20))

    lstm = functools.partial(lstm_kernel, hidden_pad=Hp, seq_len=T,
                             batch_pad=Bp)
    h_last = pl.pallas_call(
        lstm,
        out_shape=jax.ShapeDtypeStruct((Bp, Hp), mm_dtype),
        in_specs=[vmem] * 4,
        out_specs=vmem,
        scratch_shapes=[pltpu.VMEM((T * Bp, 4 * Hp), jnp.float32)],
        compiler_params=pltpu.CompilerParams(
            vmem_limit_bytes=lstm_vmem_limit),
    )(x, w_ih_p, w_hh_p, b_p)

    # ---- final FC: grid over large N-strips, parallel across TensorCores ---
    tn = _pick_fc_tile(Np, max_tile=2048)
    n_strips = Np // tn
    n_buf = 3 if n_strips >= 3 else 2             # deepen pipelining when useful

    wfc_kwargs = {}
    if n_buf > 2:
        wfc_kwargs["pipeline_mode"] = pl.Buffered(n_buf)
    wfc_spec = pl.BlockSpec((Hp, tn), lambda j: (0, j), **wfc_kwargs)

    fc_vmem_bytes = (2 * Bp * Hp * 2              # h (double-buffered)
                     + n_buf * Hp * tn * 2        # W_fc strips
                     + n_buf * tn * 4             # bias strips
                     + 2 * Bp * tn * 4)           # out strips
    fc_vmem_limit = min(64 << 20, max(2 * fc_vmem_bytes, 8 << 20))

    logits = pl.pallas_call(
        fc_kernel,
        out_shape=jax.ShapeDtypeStruct((Bp, Np), jnp.float32),
        grid=(n_strips,),
        in_specs=[pl.BlockSpec((Bp, Hp), lambda j: (0, 0)),
                  wfc_spec,
                  pl.BlockSpec((1, tn), lambda j: (0, j))],
        out_specs=pl.BlockSpec((Bp, tn), lambda j: (0, j)),
        compiler_params=pltpu.CompilerParams(
            dimension_semantics=("parallel",),
            vmem_limit_bytes=fc_vmem_limit),
    )(h_last, w_fc_p, b_fc_p)

    return logits[:B, :N]


# -----------------------------------------------------------------------------
# Pure-JAX reference mirroring torch nn.LSTM + nn.Linear semantics, with the
# same precision policy (bf16 MXU operands, f32 accumulation / elementwise).
# -----------------------------------------------------------------------------
def _reference_forward(item_ids, params, matmul_dtype=jnp.bfloat16):
    H = params["embedding"].shape[1]
    emb = jnp.take(params["embedding"].astype(matmul_dtype), item_ids, axis=0)
    w_ih_t = jnp.asarray(params["w_ih"], jnp.float32).T.astype(matmul_dtype)
    w_hh_t = jnp.asarray(params["w_hh"], jnp.float32).T.astype(matmul_dtype)
    b = (params["b_ih"] + params["b_hh"]).astype(jnp.float32)

    def cell(carry, x_t):
        h, c = carry
        gates = (jnp.dot(x_t, w_ih_t, preferred_element_type=jnp.float32)
                 + jnp.dot(h.astype(matmul_dtype), w_hh_t,
                           preferred_element_type=jnp.float32)
                 + b)
        i = jax.nn.sigmoid(gates[:, 0 * H:1 * H])
        f = jax.nn.sigmoid(gates[:, 1 * H:2 * H])
        g = jnp.tanh(gates[:, 2 * H:3 * H])
        o = jax.nn.sigmoid(gates[:, 3 * H:4 * H])
        c = f * c + i * g
        h = o * jnp.tanh(c)
        return (h, c), None

    B = item_ids.shape[0]
    h0 = jnp.zeros((B, H), jnp.float32)
    (h_last, _), _ = lax.scan(cell, (h0, h0), jnp.transpose(emb, (1, 0, 2)))
    w_fc_t = jnp.asarray(params["w_fc"], jnp.float32).T.astype(matmul_dtype)
    return (jnp.dot(h_last.astype(matmul_dtype), w_fc_t,
                    preferred_element_type=jnp.float32)
            + params["b_fc"].astype(jnp.float32))


def init_params(key, n_items, hidden_size):
    ks = jax.random.split(key, 7)
    H = hidden_size
    s = 1.0 / jnp.sqrt(H)
    return {
        "embedding": jax.random.normal(ks[0], (n_items, H), jnp.float32),
        "w_ih": jax.random.uniform(ks[1], (4 * H, H), jnp.float32, -s, s),
        "w_hh": jax.random.uniform(ks[2], (4 * H, H), jnp.float32, -s, s),
        "b_ih": jax.random.uniform(ks[3], (4 * H,), jnp.float32, -s, s),
        "b_hh": jax.random.uniform(ks[4], (4 * H,), jnp.float32, -s, s),
        "w_fc": jax.random.uniform(ks[5], (n_items, H), jnp.float32, -s, s),
        "b_fc": jax.random.uniform(ks[6], (n_items,), jnp.float32, -s, s),
    }


if __name__ == "__main__":
    # Small shapes consistent with the module: batch=2, seq=8, hidden=32, n_items=256.
    n_items, hidden_size = 256, 32
    batch, seq_len = 2, 8

    key = jax.random.PRNGKey(0)
    k_params, k_ids = jax.random.split(key)
    params = init_params(k_params, n_items, hidden_size)
    item_ids = jax.random.randint(k_ids, (batch, seq_len), 0, n_items, jnp.int32)

    out = lstm_model_forward(item_ids, params)
    out = jax.block_until_ready(out)
    assert out.shape == (batch, n_items) and out.dtype == jnp.float32

    ref = jax.block_until_ready(_reference_forward(item_ids, params))
    assert jnp.allclose(out, ref, atol=1e-3, rtol=1e-3), "mismatch vs JAX reference"

    print("KERNEL_OK")
</pallas_src>

<mosaic_0001>
module attributes {stable_mosaic.version = 11 : i64} {
  func.func @lstm_kernel(%arg0: memref<64x128xbf16, #tpu.memory_space<vmem>>, %arg1: memref<128x512xbf16, #tpu.memory_space<vmem>>, %arg2: memref<128x512xbf16, #tpu.memory_space<vmem>>, %arg3: memref<1x512xf32, #tpu.memory_space<vmem>>, %arg4: memref<8x128xbf16, #tpu.memory_space<vmem>>, %arg5: memref<64x512xf32, #tpu.memory_space<vmem>>) attributes {dimension_semantics = [], scalar_prefetch = 0 : i64, scratch_operands = 1 : i64, tpu.core_type = #tpu.core_type<tc>} {
    %c0 = arith.constant 0 : index
    %c0_0 = arith.constant 0 : index
    %0 = vector.load %arg0[%c0, %c0_0] : memref<64x128xbf16, #tpu.memory_space<vmem>>, vector<64x128xbf16>
    %c0_1 = arith.constant 0 : index
    %c0_2 = arith.constant 0 : index
    %1 = vector.load %arg1[%c0_1, %c0_2] : memref<128x512xbf16, #tpu.memory_space<vmem>>, vector<128x512xbf16>
    %cst = arith.constant dense<0.000000e+00> : vector<64x512xf32>
    %2 = tpu.matmul %0, %1, %cst {dimension_numbers = #tpu.dot_dimension_numbers<[1], [0], [0], [1], [0, 0, 1, 1], [], []>} : vector<64x128xbf16>, vector<128x512xbf16>, vector<64x512xf32> -> vector<64x512xf32>
    %c0_3 = arith.constant 0 : index
    %c0_4 = arith.constant 0 : index
    %3 = vector.load %arg3[%c0_3, %c0_4] : memref<1x512xf32, #tpu.memory_space<vmem>>, vector<1x512xf32>
    %4 = vector.broadcast %3 : vector<1x512xf32> to vector<64x512xf32>
    %5 = arith.addf %2, %4 : vector<64x512xf32>
    %c0_5 = arith.constant 0 : index
    %c0_6 = arith.constant 0 : index
    %6 = vector.load %arg5[%c0_5, %c0_6] : memref<64x512xf32, #tpu.memory_space<vmem>>, vector<64x512xf32>
    tpu.vector_store %arg5[%c0_5, %c0_6], %5 {strides = array<i32>} : memref<64x512xf32, #tpu.memory_space<vmem>>, vector<64x512xf32>,
    %c0_7 = arith.constant 0 : index
    %c0_8 = arith.constant 0 : index
    %7 = vector.load %arg2[%c0_7, %c0_8] : memref<128x512xbf16, #tpu.memory_space<vmem>>, vector<128x512xbf16>
    %cst_9 = arith.constant 0.000000e+00 : f32
    %8 = vector.broadcast %cst_9 : f32 to vector<8x128xf32>
    %cst_10 = arith.constant 0.000000e+00 : f32
    %9 = vector.broadcast %cst_10 : f32 to vector<8x128xf32>
    %c0_11 = arith.constant 0 : index
    %c0_12 = arith.constant 0 : index
    %10 = vector.load %arg5[%c0_11, %c0_12] : memref<64x512xf32, #tpu.memory_space<vmem>>, vector<8x512xf32>
    %11 = arith.truncf %8 : vector<8x128xf32> to vector<8x128xbf16>
    %cst_13 = arith.constant dense<0.000000e+00> : vector<8x512xf32>
    %12 = tpu.matmul %11, %7, %cst_13 {dimension_numbers = #tpu.dot_dimension_numbers<[1], [0], [0], [1], [0, 0, 1, 1], [], []>} : vector<8x128xbf16>, vector<128x512xbf16>, vector<8x512xf32> -> vector<8x512xf32>
    %13 = arith.addf %10, %12 : vector<8x512xf32>
    %14 = vector.extract_strided_slice %13 {offsets = [0, 0], sizes = [8, 384], strides = [1, 1]} : vector<8x512xf32> to vector<8x384xf32>
    %15 = arith.negf %14 : vector<8x384xf32>
    %16 = math.exp %15 : vector<8x384xf32>
    %cst_14 = arith.constant 1.000000e+00 : f32
    %17 = vector.broadcast %cst_14 : f32 to vector<8x384xf32>
    %18 = arith.addf %17, %16 : vector<8x384xf32>
    %19 = arith.divf %17, %18 : vector<8x384xf32>
    %20 = vector.extract_strided_slice %19 {offsets = [0, 0], sizes = [8, 128], strides = [1, 1]} : vector<8x384xf32> to vector<8x128xf32>
    %21 = vector.extract_strided_slice %19 {offsets = [0, 128], sizes = [8, 128], strides = [1, 1]} : vector<8x384xf32> to vector<8x128xf32>
    %22 = vector.extract_strided_slice %19 {offsets = [0, 256], sizes = [8, 128], strides = [1, 1]} : vector<8x384xf32> to vector<8x128xf32>
    %23 = vector.extract_strided_slice %13 {offsets = [0, 384], sizes = [8, 128], strides = [1, 1]} : vector<8x512xf32> to vector<8x128xf32>
    %24 = math.tanh %23 : vector<8x128xf32>
    %25 = arith.mulf %21, %9 : vector<8x128xf32>
    %26 = arith.mulf %20, %24 : vector<8x128xf32>
    %27 = arith.addf %25, %26 : vector<8x128xf32>
    %28 = math.tanh %27 : vector<8x128xf32>
    %29 = arith.mulf %22, %28 : vector<8x128xf32>
    %c8 = arith.constant 8 : index
    %c0_15 = arith.constant 0 : index
    %30 = vector.load %arg5[%c8, %c0_15] : memref<64x512xf32, #tpu.memory_space<vmem>>, vector<8x512xf32>
    %31 = arith.truncf %29 : vector<8x128xf32> to vector<8x128xbf16>
    %cst_16 = arith.constant dense<0.000000e+00> : vector<8x512xf32>
    %32 = tpu.matmul %31, %7, %cst_16 {dimension_numbers = #tpu.dot_dimension_numbers<[1], [0], [0], [1], [0, 0, 1, 1], [], []>} : vector<8x128xbf16>, vector<128x512xbf16>, vector<8x512xf32> -> vector<8x512xf32>
    %33 = arith.addf %30, %32 : vector<8x512xf32>
    %34 = vector.extract_strided_slice %33 {offsets = [0, 0], sizes = [8, 384], strides = [1, 1]} : vector<8x512xf32> to vector<8x384xf32>
    %35 = arith.negf %34 : vector<8x384xf32>
    %36 = math.exp %35 : vector<8x384xf32>
    %cst_17 = arith.constant 1.000000e+00 : f32
    %37 = vector.broadcast %cst_17 : f32 to vector<8x384xf32>
    %38 = arith.addf %37, %36 : vector<8x384xf32>
    %39 = arith.divf %37, %38 : vector<8x384xf32>
    %40 = vector.extract_strided_slice %39 {offsets = [0, 0], sizes = [8, 128], strides = [1, 1]} : vector<8x384xf32> to vector<8x128xf32>
    %41 = vector.extract_strided_slice %39 {offsets = [0, 128], sizes = [8, 128], strides = [1, 1]} : vector<8x384xf32> to vector<8x128xf32>
    %42 = vector.extract_strided_slice %39 {offsets = [0, 256], sizes = [8, 128], strides = [1, 1]} : vector<8x384xf32> to vector<8x128xf32>
    %43 = vector.extract_strided_slice %33 {offsets = [0, 384], sizes = [8, 128], strides = [1, 1]} : vector<8x512xf32> to vector<8x128xf32>
    %44 = math.tanh %43 : vector<8x128xf32>
    %45 = arith.mulf %41, %27 : vector<8x128xf32>
    %46 = arith.mulf %40, %44 : vector<8x128xf32>
    %47 = arith.addf %45, %46 : vector<8x128xf32>
    %48 = math.tanh %47 : vector<8x128xf32>
    %49 = arith.mulf %42, %48 : vector<8x128xf32>
    %c16 = arith.constant 16 : index
    %c0_18 = arith.constant 0 : index
    %50 = vector.load %arg5[%c16, %c0_18] : memref<64x512xf32, #tpu.memory_space<vmem>>, vector<8x512xf32>
    %51 = arith.truncf %49 : vector<8x128xf32> to vector<8x128xbf16>
    %cst_19 = arith.constant dense<0.000000e+00> : vector<8x512xf32>
    %52 = tpu.matmul %51, %7, %cst_19 {dimension_numbers = #tpu.dot_dimension_numbers<[1], [0], [0], [1], [0, 0, 1, 1], [], []>} : vector<8x128xbf16>, vector<128x512xbf16>, vector<8x512xf32> -> vector<8x512xf32>
    %53 = arith.addf %50, %52 : vector<8x512xf32>
    %54 = vector.extract_strided_slice %53 {offsets = [0, 0], sizes = [8, 384], strides = [1, 1]} : vector<8x512xf32> to vector<8x384xf32>
    %55 = arith.negf %54 : vector<8x384xf32>
    %56 = math.exp %55 : vector<8x384xf32>
    %cst_20 = arith.constant 1.000000e+00 : f32
    %57 = vector.broadcast %cst_20 : f32 to vector<8x384xf32>
    %58 = arith.addf %57, %56 : vector<8x384xf32>
    %59 = arith.divf %57, %58 : vector<8x384xf32>
    %60 = vector.extract_strided_slice %59 {offsets = [0, 0], sizes = [8, 128], strides = [1, 1]} : vector<8x384xf32> to vector<8x128xf32>
    %61 = vector.extract_strided_slice %59 {offsets = [0, 128], sizes = [8, 128], strides = [1, 1]} : vector<8x384xf32> to vector<8x128xf32>
    %62 = vector.extract_strided_slice %59 {offsets = [0, 256], sizes = [8, 128], strides = [1, 1]} : vector<8x384xf32> to vector<8x128xf32>
    %63 = vector.extract_strided_slice %53 {offsets = [0, 384], sizes = [8, 128], strides = [1, 1]} : vector<8x512xf32> to vector<8x128xf32>
    %64 = math.tanh %63 : vector<8x128xf32>
    %65 = arith.mulf %61, %47 : vector<8x128xf32>
    %66 = arith.mulf %60, %64 : vector<8x128xf32>
    %67 = arith.addf %65, %66 : vector<8x128xf32>
    %68 = math.tanh %67 : vector<8x128xf32>
    %69 = arith.mulf %62, %68 : vector<8x128xf32>
    %c24 = arith.constant 24 : index
    %c0_21 = arith.constant 0 : index
    %70 = vector.load %arg5[%c24, %c0_21] : memref<64x512xf32, #tpu.memory_space<vmem>>, vector<8x512xf32>
    %71 = arith.truncf %69 : vector<8x128xf32> to vector<8x128xbf16>
    %cst_22 = arith.constant dense<0.000000e+00> : vector<8x512xf32>
    %72 = tpu.matmul %71, %7, %cst_22 {dimension_numbers = #tpu.dot_dimension_numbers<[1], [0], [0], [1], [0, 0, 1, 1], [], []>} : vector<8x128xbf16>, vector<128x512xbf16>, vector<8x512xf32> -> vector<8x512xf32>
    %73 = arith.addf %70, %72 : vector<8x512xf32>
    %74 = vector.extract_strided_slice %73 {offsets = [0, 0], sizes = [8, 384], strides = [1, 1]} : vector<8x512xf32> to vector<8x384xf32>
    %75 = arith.negf %74 : vector<8x384xf32>
    %76 = math.exp %75 : vector<8x384xf32>
    %cst_23 = arith.constant 1.000000e+00 : f32
    %77 = vector.broadcast %cst_23 : f32 to vector<8x384xf32>
    %78 = arith.addf %77, %76 : vector<8x384xf32>
    %79 = arith.divf %77, %78 : vector<8x384xf32>
    %80 = vector.extract_strided_slice %79 {offsets = [0, 0], sizes = [8, 128], strides = [1, 1]} : vector<8x384xf32> to vector<8x128xf32>
    %81 = vector.extract_strided_slice %79 {offsets = [0, 128], sizes = [8, 128], strides = [1, 1]} : vector<8x384xf32> to vector<8x128xf32>
    %82 = vector.extract_strided_slice %79 {offsets = [0, 256], sizes = [8, 128], strides = [1, 1]} : vector<8x384xf32> to vector<8x128xf32>
    %83 = vector.extract_strided_slice %73 {offsets = [0, 384], sizes = [8, 128], strides = [1, 1]} : vector<8x512xf32> to vector<8x128xf32>
    %84 = math.tanh %83 : vector<8x128xf32>
    %85 = arith.mulf %81, %67 : vector<8x128xf32>
    %86 = arith.mulf %80, %84 : vector<8x128xf32>
    %87 = arith.addf %85, %86 : vector<8x128xf32>
    %88 = math.tanh %87 : vector<8x128xf32>
    %89 = arith.mulf %82, %88 : vector<8x128xf32>
    %c32 = arith.constant 32 : index
    %c0_24 = arith.constant 0 : index
    %90 = vector.load %arg5[%c32, %c0_24] : memref<64x512xf32, #tpu.memory_space<vmem>>, vector<8x512xf32>
    %91 = arith.truncf %89 : vector<8x128xf32> to vector<8x128xbf16>
    %cst_25 = arith.constant dense<0.000000e+00> : vector<8x512xf32>
    %92 = tpu.matmul %91, %7, %cst_25 {dimension_numbers = #tpu.dot_dimension_numbers<[1], [0], [0], [1], [0, 0, 1, 1], [], []>} : vector<8x128xbf16>, vector<128x512xbf16>, vector<8x512xf32> -> vector<8x512xf32>
    %93 = arith.addf %90, %92 : vector<8x512xf32>
    %94 = vector.extract_strided_slice %93 {offsets = [0, 0], sizes = [8, 384], strides = [1, 1]} : vector<8x512xf32> to vector<8x384xf32>
    %95 = arith.negf %94 : vector<8x384xf32>
    %96 = math.exp %95 : vector<8x384xf32>
    %cst_26 = arith.constant 1.000000e+00 : f32
    %97 = vector.broadcast %cst_26 : f32 to vector<8x384xf32>
    %98 = arith.addf %97, %96 : vector<8x384xf32>
    %99 = arith.divf %97, %98 : vector<8x384xf32>
    %100 = vector.extract_strided_slice %99 {offsets = [0, 0], sizes = [8, 128], strides = [1, 1]} : vector<8x384xf32> to vector<8x128xf32>
    %101 = vector.extract_strided_slice %99 {offsets = [0, 128], sizes = [8, 128], strides = [1, 1]} : vector<8x384xf32> to vector<8x128xf32>
    %102 = vector.extract_strided_slice %99 {offsets = [0, 256], sizes = [8, 128], strides = [1, 1]} : vector<8x384xf32> to vector<8x128xf32>
    %103 = vector.extract_strided_slice %93 {offsets = [0, 384], sizes = [8, 128], strides = [1, 1]} : vector<8x512xf32> to vector<8x128xf32>
    %104 = math.tanh %103 : vector<8x128xf32>
    %105 = arith.mulf %101, %87 : vector<8x128xf32>
    %106 = arith.mulf %100, %104 : vector<8x128xf32>
    %107 = arith.addf %105, %106 : vector<8x128xf32>
    %108 = math.tanh %107 : vector<8x128xf32>
    %109 = arith.mulf %102, %108 : vector<8x128xf32>
    %c40 = arith.constant 40 : index
    %c0_27 = arith.constant 0 : index
    %110 = vector.load %arg5[%c40, %c0_27] : memref<64x512xf32, #tpu.memory_space<vmem>>, vector<8x512xf32>
    %111 = arith.truncf %109 : vector<8x128xf32> to vector<8x128xbf16>
    %cst_28 = arith.constant dense<0.000000e+00> : vector<8x512xf32>
    %112 = tpu.matmul %111, %7, %cst_28 {dimension_numbers = #tpu.dot_dimension_numbers<[1], [0], [0], [1], [0, 0, 1, 1], [], []>} : vector<8x128xbf16>, vector<128x512xbf16>, vector<8x512xf32> -> vector<8x512xf32>
    %113 = arith.addf %110, %112 : vector<8x512xf32>
    %114 = vector.extract_strided_slice %113 {offsets = [0, 0], sizes = [8, 384], strides = [1, 1]} : vector<8x512xf32> to vector<8x384xf32>
    %115 = arith.negf %114 : vector<8x384xf32>
    %116 = math.exp %115 : vector<8x384xf32>
    %cst_29 = arith.constant 1.000000e+00 : f32
    %117 = vector.broadcast %cst_29 : f32 to vector<8x384xf32>
    %118 = arith.addf %117, %116 : vector<8x384xf32>
    %119 = arith.divf %117, %118 : vector<8x384xf32>
    %120 = vector.extract_strided_slice %119 {offsets = [0, 0], sizes = [8, 128], strides = [1, 1]} : vector<8x384xf32> to vector<8x128xf32>
    %121 = vector.extract_strided_slice %119 {offsets = [0, 128], sizes = [8, 128], strides = [1, 1]} : vector<8x384xf32> to vector<8x128xf32>
    %122 = vector.extract_strided_slice %119 {offsets = [0, 256], sizes = [8, 128], strides = [1, 1]} : vector<8x384xf32> to vector<8x128xf32>
    %123 = vector.extract_strided_slice %113 {offsets = [0, 384], sizes = [8, 128], strides = [1, 1]} : vector<8x512xf32> to vector<8x128xf32>
    %124 = math.tanh %123 : vector<8x128xf32>
    %125 = arith.mulf %121, %107 : vector<8x128xf32>
    %126 = arith.mulf %120, %124 : vector<8x128xf32>
    %127 = arith.addf %125, %126 : vector<8x128xf32>
    %128 = math.tanh %127 : vector<8x128xf32>
    %129 = arith.mulf %122, %128 : vector<8x128xf32>
    %c48 = arith.constant 48 : index
    %c0_30 = arith.constant 0 : index
    %130 = vector.load %arg5[%c48, %c0_30] : memref<64x512xf32, #tpu.memory_space<vmem>>, vector<8x512xf32>
    %131 = arith.truncf %129 : vector<8x128xf32> to vector<8x128xbf16>
    %cst_31 = arith.constant dense<0.000000e+00> : vector<8x512xf32>
    %132 = tpu.matmul %131, %7, %cst_31 {dimension_numbers = #tpu.dot_dimension_numbers<[1], [0], [0], [1], [0, 0, 1, 1], [], []>} : vector<8x128xbf16>, vector<128x512xbf16>, vector<8x512xf32> -> vector<8x512xf32>
    %133 = arith.addf %130, %132 : vector<8x512xf32>
    %134 = vector.extract_strided_slice %133 {offsets = [0, 0], sizes = [8, 384], strides = [1, 1]} : vector<8x512xf32> to vector<8x384xf32>
    %135 = arith.negf %134 : vector<8x384xf32>
    %136 = math.exp %135 : vector<8x384xf32>
    %cst_32 = arith.constant 1.000000e+00 : f32
    %137 = vector.broadcast %cst_32 : f32 to vector<8x384xf32>
    %138 = arith.addf %137, %136 : vector<8x384xf32>
    %139 = arith.divf %137, %138 : vector<8x384xf32>
    %140 = vector.extract_strided_slice %139 {offsets = [0, 0], sizes = [8, 128], strides = [1, 1]} : vector<8x384xf32> to vector<8x128xf32>
    %141 = vector.extract_strided_slice %139 {offsets = [0, 128], sizes = [8, 128], strides = [1, 1]} : vector<8x384xf32> to vector<8x128xf32>
    %142 = vector.extract_strided_slice %139 {offsets = [0, 256], sizes = [8, 128], strides = [1, 1]} : vector<8x384xf32> to vector<8x128xf32>
    %143 = vector.extract_strided_slice %133 {offsets = [0, 384], sizes = [8, 128], strides = [1, 1]} : vector<8x512xf32> to vector<8x128xf32>
    %144 = math.tanh %143 : vector<8x128xf32>
    %145 = arith.mulf %141, %127 : vector<8x128xf32>
    %146 = arith.mulf %140, %144 : vector<8x128xf32>
    %147 = arith.addf %145, %146 : vector<8x128xf32>
    %148 = math.tanh %147 : vector<8x128xf32>
    %149 = arith.mulf %142, %148 : vector<8x128xf32>
    %c56 = arith.constant 56 : index
    %c0_33 = arith.constant 0 : index
    %150 = vector.load %arg5[%c56, %c0_33] : memref<64x512xf32, #tpu.memory_space<vmem>>, vector<8x512xf32>
    %151 = arith.truncf %149 : vector<8x128xf32> to vector<8x128xbf16>
    %cst_34 = arith.constant dense<0.000000e+00> : vector<8x512xf32>
    %152 = tpu.matmul %151, %7, %cst_34 {dimension_numbers = #tpu.dot_dimension_numbers<[1], [0], [0], [1], [0, 0, 1, 1], [], []>} : vector<8x128xbf16>, vector<128x512xbf16>, vector<8x512xf32> -> vector<8x512xf32>
    %153 = arith.addf %150, %152 : vector<8x512xf32>
    %154 = vector.extract_strided_slice %153 {offsets = [0, 0], sizes = [8, 384], strides = [1, 1]} : vector<8x512xf32> to vector<8x384xf32>
    %155 = arith.negf %154 : vector<8x384xf32>
    %156 = math.exp %155 : vector<8x384xf32>
    %cst_35 = arith.constant 1.000000e+00 : f32
    %157 = vector.broadcast %cst_35 : f32 to vector<8x384xf32>
    %158 = arith.addf %157, %156 : vector<8x384xf32>
    %159 = arith.divf %157, %158 : vector<8x384xf32>
    %160 = vector.extract_strided_slice %159 {offsets = [0, 0], sizes = [8, 128], strides = [1, 1]} : vector<8x384xf32> to vector<8x128xf32>
    %161 = vector.extract_strided_slice %159 {offsets = [0, 128], sizes = [8, 128], strides = [1, 1]} : vector<8x384xf32> to vector<8x128xf32>
    %162 = vector.extract_strided_slice %159 {offsets = [0, 256], sizes = [8, 128], strides = [1, 1]} : vector<8x384xf32> to vector<8x128xf32>
    %163 = vector.extract_strided_slice %153 {offsets = [0, 384], sizes = [8, 128], strides = [1, 1]} : vector<8x512xf32> to vector<8x128xf32>
    %164 = math.tanh %163 : vector<8x128xf32>
    %165 = arith.mulf %161, %147 : vector<8x128xf32>
    %166 = arith.mulf %160, %164 : vector<8x128xf32>
    %167 = arith.addf %165, %166 : vector<8x128xf32>
    %168 = math.tanh %167 : vector<8x128xf32>
    %169 = arith.mulf %162, %168 : vector<8x128xf32>
    %170 = arith.truncf %169 : vector<8x128xf32> to vector<8x128xbf16>
    %c0_36 = arith.constant 0 : index
    %c0_37 = arith.constant 0 : index
    %171 = vector.load %arg4[%c0_36, %c0_37] : memref<8x128xbf16, #tpu.memory_space<vmem>>, vector<8x128xbf16>
    tpu.vector_store %arg4[%c0_36, %c0_37], %170 {strides = array<i32>} : memref<8x128xbf16, #tpu.memory_space<vmem>>, vector<8x128xbf16>,
    return
  }
}

module attributes {stable_mosaic.version = 11 : i64} {
  func.func @fc_kernel(%arg0: i32, %arg1: memref<8x128xbf16, #tpu.memory_space<vmem>>, %arg2: memref<128x128xbf16, #tpu.memory_space<vmem>>, %arg3: memref<1x128xf32, #tpu.memory_space<vmem>>, %arg4: memref<8x128xf32, #tpu.memory_space<vmem>>) attributes {dimension_semantics = [#tpu.dimension_semantics<parallel>], iteration_bounds = array<i64: 2>, scalar_prefetch = 0 : i64, scratch_operands = 0 : i64, tpu.core_type = #tpu.core_type<tc>, window_params = [{pipeline_mode = #tpu.pipeline_mode<synchronous>, transform_indices = @transform_0, window_bounds = array<i64: 8, 128>}, {transform_indices = @transform_1, window_bounds = array<i64: 128, 128>}, {transform_indices = @transform_2, window_bounds = array<i64: 1, 128>}, {transform_indices = @transform_3, window_bounds = array<i64: 8, 128>}]} {
    %c0 = arith.constant 0 : index
    %c0_0 = arith.constant 0 : index
    %0 = vector.load %arg1[%c0, %c0_0] : memref<8x128xbf16, #tpu.memory_space<vmem>>, vector<8x128xbf16>
    %c0_1 = arith.constant 0 : index
    %c0_2 = arith.constant 0 : index
    %1 = vector.load %arg2[%c0_1, %c0_2] : memref<128x128xbf16, #tpu.memory_space<vmem>>, vector<128x128xbf16>
    %cst = arith.constant dense<0.000000e+00> : vector<8x128xf32>
    %2 = tpu.matmul %0, %1, %cst {dimension_numbers = #tpu.dot_dimension_numbers<[1], [0], [0], [1], [0, 0, 1, 1], [], []>} : vector<8x128xbf16>, vector<128x128xbf16>, vector<8x128xf32> -> vector<8x128xf32>
    %c0_3 = arith.constant 0 : index
    %c0_4 = arith.constant 0 : index
    %3 = vector.load %arg3[%c0_3, %c0_4] : memref<1x128xf32, #tpu.memory_space<vmem>>, vector<1x128xf32>
    %4 = vector.broadcast %3 : vector<1x128xf32> to vector<8x128xf32>
    %5 = arith.addf %2, %4 : vector<8x128xf32>
    %c0_5 = arith.constant 0 : index
    %c0_6 = arith.constant 0 : index
    %6 = vector.load %arg4[%c0_5, %c0_6] : memref<8x128xf32, #tpu.memory_space<vmem>>, vector<8x128xf32>
    tpu.vector_store %arg4[%c0_5, %c0_6], %5 {strides = array<i32>} : memref<8x128xf32, #tpu.memory_space<vmem>>, vector<8x128xf32>,
    return
  }
  func.func @transform_0(%arg0: i32) -> (i32, i32) {
    %c0_i32 = arith.constant 0 : i32
    %c0_i32_0 = arith.constant 0 : i32
    %c0_i32_1 = arith.constant 0 : i32
    return %c0_i32, %c0_i32_0 : i32, i32
  }
  func.func @transform_1(%arg0: i32) -> (i32, i32) {
    %c0_i32 = arith.constant 0 : i32
    %c0_i32_0 = arith.constant 0 : i32
    return %c0_i32, %arg0 : i32, i32
  }
  func.func @transform_2(%arg0: i32) -> (i32, i32) {
    %c0_i32 = arith.constant 0 : i32
    %c0_i32_0 = arith.constant 0 : i32
    return %c0_i32, %arg0 : i32, i32
  }
  func.func @transform_3(%arg0: i32) -> (i32, i32) {
    %c0_i32 = arith.constant 0 : i32
    %c0_i32_0 = arith.constant 0 : i32
    return %c0_i32, %arg0 : i32, i32
  }
}

</mosaic_0001>

<bundles_post_ra>
// kernel: lstm_model_forward.3
= control target key start
LH: loop header
LB: loop body
LE: loop exit
PB: predicated region body
PF: predicated region fallthrough
CT: control target
= control target key end

     0   :  { %s557_s12 = smov 0   ;;  %s559_s13 = smov 0   ;;  %s635_s0 = inlined_call_operand.vmem [shape: bf16[8,128], index: 0, kind: input, shape index: {}]   ;;  %s636_s1 = inlined_call_operand.vmem [shape: bf16[128,256], index: 1, kind: input, shape index: {}]   ;;  %s637_s2 = inlined_call_operand.vmem [shape: f32[1,256], index: 2, kind: input, shape index: {}]   ;;  %s638_s3 = inlined_call_operand.vmem [shape: f32[8,256], index: 3, kind: output, shape index: {}]  }
   0x1   :  { %s561_s14 = smov 0  }
   0x2 LB: > { %s437_s15 = sadd.s32 4294967295, %s535_s14   ;;  %s574_s16 = sadd.s32 1, %s535_s14   ;;  %s535_s14 = sphi %s561_s14, %s641_s14   ;;  %s531_s13 = sphi %s559_s13, %s640_s13   ;;  %s527_s12 = sphi %s557_s12, %s639_s12  }
   0x3   : > { %s38_s17 = ssub.s32 %s535_s14, %s574_s16  ;;  %s41_s18 = sadd.s32 1, %s531_s13 }
   0x4   : > { %p39_p0 = scmp.eq.s32.totalorder %s38_s17, 0  ;;  %p48_p1 = scmp.ne.s32.totalorder %s531_s13, %s527_s12 }
   0x5   : > { %p49_p2 = scmp.eq.s32.totalorder %s535_s14, 0  ;;  %p440_p4 = scmp.ge.s32.totalorder %s535_s14, 2 }
   0x6   : > { %s583_s19 = scalar_select %p39_p0, %s531_s13, %s41_s18  }
   0x7   : > { %p50_p3 = por %p49_p2, %p48_p1  ;;  %129 = sbr.rel (%p440_p4) target bundleno = 32 (0x20), region = 20 }
   0xc   : > { %132 = sbr.rel (!%p50_p3) target bundleno = 32 (0x20), region = 24  ;;  %s134_s20 = sand.u32 (%p50_p3), 1, %s531_s13  }
   0xd   : > { %s442_s21 = sshll.u32 (%p50_p3), %s535_s14, 2  ;;  %s441_s22 = sshll.u32 (%p50_p3), %s134_s20, 6 }
   0xe   : > { %s591_s25 = scalar_lea.vmem (%p50_p3), %s636_s1, %s442_s21  ;;  %s136_s26 = scalar_lea.vmem (%p50_p3), [#allocation2], %s441_s22 }
   0xf   : > { %v155_v0 = vld [vmem:[%s591_s25] sm:$0xf] (%p50_p3)  ;;  %v157_v1 = vld [vmem:[%s591_s25 + $0x8] sm:$0xf] (%p50_p3)  ;;  %v159_v2 = vld [vmem:[%s591_s25 + $0x10] sm:$0xf] (%p50_p3) }
  0x10   : > { %156 = vst [vmem:[%s136_s26] sm:$0xf] (%p50_p3), %v155_v0  ;;  %v161_v3 = vld [vmem:[%s591_s25 + $0x18] sm:$0xf] (%p50_p3)  ;;  %v163_v4 = vld [vmem:[%s591_s25 + $0x20] sm:$0xf] (%p50_p3) }
  0x11   : > { %158 = vst [vmem:[%s136_s26 + $0x4] sm:$0xf] %v157_v1  ;;  %v165_v5 = vld [vmem:[%s591_s25 + $0x28] sm:$0xf]  ;;  %v167_v6 = vld [vmem:[%s591_s25 + $0x30] sm:$0xf] }
  0x12   : > { %160 = vst [vmem:[%s136_s26 + $0x8] sm:$0xf] %v159_v2  ;;  %v169_v7 = vld [vmem:[%s591_s25 + $0x38] sm:$0xf]  ;;  %v171_v8 = vld [vmem:[%s591_s25 + $0x40] sm:$0xf] }
  0x13   : > { %162 = vst [vmem:[%s136_s26 + $0xc] sm:$0xf] %v161_v3  ;;  %v173_v9 = vld [vmem:[%s591_s25 + $0x48] sm:$0xf]  ;;  %v175_v10 = vld [vmem:[%s591_s25 + $0x50] sm:$0xf] }
  0x14   : > { %164 = vst [vmem:[%s136_s26 + $0x10] sm:$0xf] %v163_v4  ;;  %v177_v11 = vld [vmem:[%s591_s25 + $0x58] sm:$0xf]  ;;  %v179_v12 = vld [vmem:[%s591_s25 + $0x60] sm:$0xf] }
  0x15   : > { %166 = vst [vmem:[%s136_s26 + $0x14] sm:$0xf] %v165_v5  ;;  %v181_v13 = vld [vmem:[%s591_s25 + $0x68] sm:$0xf]  ;;  %v183_v14 = vld [vmem:[%s591_s25 + $0x70] sm:$0xf] }
  0x16   : > { %168 = vst [vmem:[%s136_s26 + $0x18] sm:$0xf] %v167_v6  ;;  %v185_v15 = vld [vmem:[%s591_s25 + $0x78] sm:$0xf] }
  0x17   : > { %170 = vst [vmem:[%s136_s26 + $0x1c] sm:$0xf] %v169_v7 }
  0x18   : > { %172 = vst [vmem:[%s136_s26 + $0x20] sm:$0xf] %v171_v8 }
  0x19   : > { %174 = vst [vmem:[%s136_s26 + $0x24] sm:$0xf] %v173_v9 }
  0x1a   : > { %176 = vst [vmem:[%s136_s26 + $0x28] sm:$0xf] %v175_v10 }
  0x1b   : > { %178 = vst [vmem:[%s136_s26 + $0x2c] sm:$0xf] %v177_v11 }
  0x1c   : > { %180 = vst [vmem:[%s136_s26 + $0x30] sm:$0xf] %v179_v12 }
  0x1d   : > { %182 = vst [vmem:[%s136_s26 + $0x34] sm:$0xf] %v181_v13 }
  0x1e   : > { %184 = vst [vmem:[%s136_s26 + $0x38] sm:$0xf] %v183_v14 }
  0x1f   : > { %186 = vst [vmem:[%s136_s26 + $0x3c] sm:$0xf] %v185_v15 }
  0x20 PF: > { %p443_p5 = scmp.ge.s32.totalorder %s535_s14, 1  ;;  %p247_p6 = scmp.lt.s32.totalorder %s535_s14, 3 }
  0x22   : > { %p248_p7 = pnand %p443_p5, %p247_p6 }
  0x23   : > { %s254_s27 = sand.u32 (!%p248_p7), 1, %s527_s12   ;;  %p279_p8 = scmp.lt.s32.totalorder (!%p248_p7), %s437_s15, 1 }
  0x24   : > { %251 = sbr.rel (%p248_p7) target bundleno = 207 (0xcf), region = 69  ;;  %s444_s28 = sshll.u32 (!%p248_p7), %s254_s27, 6 }
  0x25   : > { %s256_s29 = scalar_lea.vmem (!%p248_p7), [#allocation2], %s444_s28 }
  0x29   : > { %v487_v16 = vld [vmem:[%s256_s29 + $0x38] sm:$0xff]  ;;  %s643_s15 = smov (!%p279_p8, %s437_s15), 1  ;;  %v486_v17 = vld [vmem:[%s256_s29 + $0x30] sm:$0xff]  ;;  %v485_v18 = vld [vmem:[%s256_s29 + $0x28] sm:$0xff] }
  0x2a   : > { %355 = vmatpush.bf16.msra.mxu0 %v487_v16  ;;  %s281_s5 = scalar_lea.vmem %s637_s2, %s643_s15  ;;  %v484_v19 = vld [vmem:[%s256_s29 + $0x20] sm:$0xff]  ;;  %v483_v20 = vld [vmem:[%s256_s29 + $0x18] sm:$0xff]  ;;  %v482_v21 = vld [vmem:[%s256_s29 + $0x10] sm:$0xff]  ;;  %s445_s8 = sshll.u32 %s643_s15, 3 }
  0x2b   : > { %v481_v22 = vld [vmem:[%s256_s29 + $0x8] sm:$0xff]  ;;  %v480_v23 = vld [vmem:[%s256_s29] sm:$0xff]  ;;  %s285_s11 = scalar_lea.vmem %s638_s3, %s445_s8 }
  0x2c   : > { %v286_v24 = vld [vmem:[%s635_s0] sm:$0xf] }
  0x2d   : > { %v512_v25 = vld [vmem:[%s281_s5] ss:$0 sm:$0xff] }
  0x2e   : > { %356 = vmatpush.bf16.msra.mxu0 %v486_v17 }
  0x32   : > { %357 = vmatpush.bf16.msra.mxu0 %v485_v18 }
  0x36   : > { %358 = vmatpush.bf16.msra.mxu0 %v484_v19 }
  0x3a   : > { %359 = vmatpush.bf16.msra.mxu0 %v483_v20 }
  0x3e   : > { %360 = vmatpush.bf16.msra.mxu0 %v482_v21 }
  0x42   : > { %361 = vmatpush.bf16.msra.mxu0 %v481_v22 }
  0x46   : > { %362 = vmatpush.bf16.msra.mxu0 %v480_v23 }
  0x49   : > { %363 = vmatmul.bf16.vlgmr.msra.gmra.mxu0 %v286_v24 }
  0xc6   : > { %v364_v26 = vpop.f32.mrf.mxu0 }
  0xc7   : > { %v365_v27 = vadd.f32 %v512_v25, %v364_v26 }
  0xc9   : > { %368 = vst [vmem:[%s285_s11] sm:$0xff] %v365_v27 }
  0xce   : > { %v366_v28 = vpop.f32.mrf.mxu0 }
  0xcf PF: > { %p10_p9 = scmp.ge.s32.totalorder %s574_s16, 4   ;;  %s639_s12 = smov %s531_s13 }
  0xd0   : > { %s640_s13 = smov %s583_s19  ;;  %s641_s14 = smov %s574_s16 }
  0xd1   :  { %12 = sbr.rel (!%p10_p9) target bundleno = 2 (0x2), region = 111 }

// kernel: lstm_model_forward.2
= control target key start
LH: loop header
LB: loop body
LE: loop exit
PB: predicated region body
PF: predicated region fallthrough
CT: control target
= control target key end

     0   :  { %s2958_s1 = inlined_call_operand.vmem [shape: bf16[128,512], index: 1, kind: input, shape index: {}]   ;;  %s2959_s2 = inlined_call_operand.vmem [shape: bf16[128,512], index: 2, kind: input, shape index: {}]   ;;  %s2960_s0 = inlined_call_operand.vmem [shape: bf16[64,128], index: 0, kind: input, shape index: {}]   ;;  %s2961_s3 = inlined_call_operand.vmem [shape: f32[1,512], index: 3, kind: input, shape index: {}]   ;;  %s2962_s4 = inlined_call_operand.vmem [shape: bf16[8,128], index: 4, kind: output, shape index: {}]  }
   0x1   :  { %v1719_v0 = vld [vmem:[%s2958_s1 + $0xe0] sm:$0xf]  ;;  %v1919_v1 = vld [vmem:[%s2958_s1 + $0xec] sm:$0xf0]  ;;  %v1917_v2 = vld [vmem:[%s2958_s1 + $0xe4] sm:$0xf] }
   0x2   :  { %v1720_v3 = vor.u32 %v1919_v1, %v1719_v0  ;;  %v1721_v4 = vld [vmem:[%s2958_s1 + $0xf0] sm:$0xf0]  ;;  %v1727_v5 = vld [vmem:[%s2958_s1 + $0xe8] sm:$0xf]  ;;  %v1920_v6 = vld [vmem:[%s2958_s1 + $0xf4] sm:$0xf0] }
   0x3   :  { %v1724_v7 = vor.u32 %v1917_v2, %v1721_v4  ;;  %v1728_v8 = vor.u32 %v1920_v6, %v1727_v5  ;;  %v1918_v9 = vld [vmem:[%s2958_s1 + $0xec] sm:$0xf]  ;;  %v1729_v10 = vld [vmem:[%s2958_s1 + $0xf8] sm:$0xf0]  ;;  %v1703_v11 = vld [vmem:[%s2958_s1 + $0xc0] sm:$0xf] }
   0x4   :  { %252 = vmatpush.bf16.msra.mxu0 %v1720_v3  ;;  %v1732_v12 = vor.u32 %v1918_v9, %v1729_v10  ;;  %v1915_v13 = vld [vmem:[%s2958_s1 + $0xcc] sm:$0xf0]  ;;  %v1913_v14 = vld [vmem:[%s2958_s1 + $0xc4] sm:$0xf]  ;;  %v1705_v15 = vld [vmem:[%s2958_s1 + $0xd0] sm:$0xf0] }
   0x5   :  { %281 = vmatpush.bf16.msra.mxu1 %v1724_v7  ;;  %310 = vmatpush.bf16.msra.mxu2 %v1728_v8  ;;  %v1704_v16 = vor.u32 %v1915_v13, %v1703_v11  ;;  %v1708_v17 = vor.u32 %v1913_v14, %v1705_v15  ;;  %v1711_v18 = vld [vmem:[%s2958_s1 + $0xc8] sm:$0xf]  ;;  %v1916_v19 = vld [vmem:[%s2958_s1 + $0xd4] sm:$0xf0]  ;;  %v1914_v20 = vld [vmem:[%s2958_s1 + $0xcc] sm:$0xf] }
   0x6   :  { %339 = vmatpush.bf16.msra.mxu3 %v1732_v12  ;;  %v1712_v21 = vor.u32 %v1916_v19, %v1711_v18  ;;  %v1713_v22 = vld [vmem:[%s2958_s1 + $0xd8] sm:$0xf0]  ;;  %v1687_v23 = vld [vmem:[%s2958_s1 + $0xa0] sm:$0xf]  ;;  %v1911_v24 = vld [vmem:[%s2958_s1 + $0xac] sm:$0xf0] }
   0x7   :  { %v1716_v25 = vor.u32 %v1914_v20, %v1713_v22  ;;  %v1909_v26 = vld [vmem:[%s2958_s1 + $0xa4] sm:$0xf]  ;;  %v1689_v27 = vld [vmem:[%s2958_s1 + $0xb0] sm:$0xf0]  ;;  %v1695_v28 = vld [vmem:[%s2958_s1 + $0xa8] sm:$0xf]  ;;  %v1688_v29 = vor.u32 %v1911_v24, %v1687_v23 }
   0x8   :  { %253 = vmatpush.bf16.msra.mxu0 %v1704_v16  ;;  %v1912_v30 = vld [vmem:[%s2958_s1 + $0xb4] sm:$0xf0]  ;;  %v1910_v31 = vld [vmem:[%s2958_s1 + $0xac] sm:$0xf]  ;;  %v1697_v32 = vld [vmem:[%s2958_s1 + $0xb8] sm:$0xf0]  ;;  %v1692_v33 = vor.u32 %v1909_v26, %v1689_v27 }
   0x9   :  { %282 = vmatpush.bf16.msra.mxu1 %v1708_v17  ;;  %311 = vmatpush.bf16.msra.mxu2 %v1712_v21  ;;  %v1696_v34 = vor.u32 %v1912_v30, %v1695_v28  ;;  %v1671_v35 = vld [vmem:[%s2958_s1 + $0x80] sm:$0xf]  ;;  %v1907_v36 = vld [vmem:[%s2958_s1 + $0x8c] sm:$0xf0]  ;;  %v1905_v37 = vld [vmem:[%s2958_s1 + $0x84] sm:$0xf]  ;;  %v1700_v38 = vor.u32 %v1910_v31, %v1697_v32 }
   0xa   :  { %340 = vmatpush.bf16.msra.mxu3 %v1716_v25  ;;  %v1673_v39 = vld [vmem:[%s2958_s1 + $0x90] sm:$0xf0]  ;;  %v1679_v40 = vld [vmem:[%s2958_s1 + $0x88] sm:$0xf]  ;;  %v1908_v41 = vld [vmem:[%s2958_s1 + $0x94] sm:$0xf0]  ;;  %v1672_v44 = vor.u32 %v1907_v36, %v1671_v35 }
   0xb   :  { %v1906_v42 = vld [vmem:[%s2958_s1 + $0x8c] sm:$0xf]  ;;  %v1681_v43 = vld [vmem:[%s2958_s1 + $0x98] sm:$0xf0]  ;;  %v1676_v45 = vor.u32 %v1905_v37, %v1673_v39  ;;  %v1680_v46 = vor.u32 %v1908_v41, %v1679_v40  ;;  %v1655_v47 = vld [vmem:[%s2958_s1 + $0x60] sm:$0xf] }
   0xc   :  { %254 = vmatpush.bf16.msra.mxu0 %v1688_v29  ;;  %v1903_v48 = vld [vmem:[%s2958_s1 + $0x6c] sm:$0xf0]  ;;  %v1901_v49 = vld [vmem:[%s2958_s1 + $0x64] sm:$0xf]  ;;  %v1684_v50 = vor.u32 %v1906_v42, %v1681_v43  ;;  %v1657_v51 = vld [vmem:[%s2958_s1 + $0x70] sm:$0xf0] }
   0xd   :  { %283 = vmatpush.bf16.msra.mxu1 %v1692_v33  ;;  %312 = vmatpush.bf16.msra.mxu2 %v1696_v34  ;;  %v1663_v52 = vld [vmem:[%s2958_s1 + $0x68] sm:$0xf]  ;;  %v1904_v53 = vld [vmem:[%s2958_s1 + $0x74] sm:$0xf0]  ;;  %v1902_v54 = vld [vmem:[%s2958_s1 + $0x6c] sm:$0xf]  ;;  %v1656_v56 = vor.u32 %v1903_v48, %v1655_v47  ;;  %v1660_v57 = vor.u32 %v1901_v49, %v1657_v51 }
   0xe   :  { %341 = vmatpush.bf16.msra.mxu3 %v1700_v38  ;;  %v1665_v55 = vld [vmem:[%s2958_s1 + $0x78] sm:$0xf0]  ;;  %v1664_v58 = vor.u32 %v1904_v53, %v1663_v52  ;;  %v1639_v59 = vld [vmem:[%s2958_s1 + $0x40] sm:$0xf]  ;;  %v1899_v60 = vld [vmem:[%s2958_s1 + $0x4c] sm:$0xf0] }
   0xf   :  { %v1897_v61 = vld [vmem:[%s2958_s1 + $0x44] sm:$0xf]  ;;  %v1668_v62 = vor.u32 %v1902_v54, %v1665_v55  ;;  %v1641_v63 = vld [vmem:[%s2958_s1 + $0x50] sm:$0xf0]  ;;  %v1647_v0 = vld [vmem:[%s2958_s1 + $0x48] sm:$0xf]  ;;  %v1640_v4 = vor.u32 %v1899_v60, %v1639_v59 }
  0x10   :  { %255 = vmatpush.bf16.msra.mxu0 %v1672_v44  ;;  %v1900_v1 = vld [vmem:[%s2958_s1 + $0x54] sm:$0xf0]  ;;  %v1898_v2 = vld [vmem:[%s2958_s1 + $0x4c] sm:$0xf]  ;;  %v1649_v3 = vld [vmem:[%s2958_s1 + $0x58] sm:$0xf0]  ;;  %v1644_v5 = vor.u32 %v1897_v61, %v1641_v63 }
  0x11   :  { %284 = vmatpush.bf16.msra.mxu1 %v1676_v45  ;;  %313 = vmatpush.bf16.msra.mxu2 %v1680_v46  ;;  %v1648_v6 = vor.u32 %v1900_v1, %v1647_v0  ;;  %v1623_v7 = vld [vmem:[%s2958_s1 + $0x20] sm:$0xf]  ;;  %v1895_v8 = vld [vmem:[%s2958_s1 + $0x2c] sm:$0xf0]  ;;  %v1893_v9 = vld [vmem:[%s2958_s1 + $0x24] sm:$0xf]  ;;  %v1652_v10 = vor.u32 %v1898_v2, %v1649_v3 }
  0x12   :  { %342 = vmatpush.bf16.msra.mxu3 %v1684_v50  ;;  %v1625_v11 = vld [vmem:[%s2958_s1 + $0x30] sm:$0xf0]  ;;  %v1631_v12 = vld [vmem:[%s2958_s1 + $0x28] sm:$0xf]  ;;  %v1896_v13 = vld [vmem:[%s2958_s1 + $0x34] sm:$0xf0]  ;;  %v1624_v16 = vor.u32 %v1895_v8, %v1623_v7 }
  0x13   :  { %v1894_v14 = vld [vmem:[%s2958_s1 + $0x2c] sm:$0xf]  ;;  %v1633_v15 = vld [vmem:[%s2958_s1 + $0x38] sm:$0xf0]  ;;  %v1607_v17 = vld [vmem:[%s2958_s1] sm:$0xf]  ;;  %v1628_v18 = vor.u32 %v1893_v9, %v1625_v11  ;;  %v1632_v19 = vor.u32 %v1896_v13, %v1631_v12 }
  0x14   :  { %256 = vmatpush.bf16.msra.mxu0 %v1656_v56  ;;  %v1891_v20 = vld [vmem:[%s2958_s1 + $0xc] sm:$0xf0]  ;;  %v1889_v21 = vld [vmem:[%s2958_s1 + $0x4] sm:$0xf]  ;;  %v1609_v22 = vld [vmem:[%s2958_s1 + $0x10] sm:$0xf0]  ;;  %v1636_v23 = vor.u32 %v1894_v14, %v1633_v15 }
  0x15   :  { %285 = vmatpush.bf16.msra.mxu1 %v1660_v57  ;;  %314 = vmatpush.bf16.msra.mxu2 %v1664_v58  ;;  %v1615_v24 = vld [vmem:[%s2958_s1 + $0x8] sm:$0xf]  ;;  %v1892_v25 = vld [vmem:[%s2958_s1 + $0x14] sm:$0xf0]  ;;  %v1890_v26 = vld [vmem:[%s2958_s1 + $0xc] sm:$0xf]  ;;  %v1608_v30 = vor.u32 %v1891_v20, %v1607_v17  ;;  %v1612_v33 = vor.u32 %v1889_v21, %v1609_v22 }
  0x16   :  { %343 = vmatpush.bf16.msra.mxu3 %v1668_v62  ;;  %v1617_v27 = vld [vmem:[%s2958_s1 + $0x18] sm:$0xf0]  ;;  %v1847_v28 = vld [vmem:[%s2959_s2 + $0xe0] sm:$0xf]  ;;  %v1951_v29 = vld [vmem:[%s2959_s2 + $0xec] sm:$0xf0]  ;;  %v1616_v34 = vor.u32 %v1892_v25, %v1615_v24 }
  0x17   :  { %v1949_v31 = vld [vmem:[%s2959_s2 + $0xe4] sm:$0xf]  ;;  %v1849_v32 = vld [vmem:[%s2959_s2 + $0xf0] sm:$0xf0]  ;;  %v1620_v36 = vor.u32 %v1890_v26, %v1617_v27  ;;  %v2315_v37 = vor.u32 %v1951_v29, %v1847_v28  ;;  %v1855_v38 = vld [vmem:[%s2959_s2 + $0xe8] sm:$0xf] }
  0x18   :  { %257 = vmatpush.bf16.msra.mxu0 %v1640_v4  ;;  %v1885_v35 = vld [vmem:[%s2960_s0] sm:$0xff]  ;;  %v1952_v39 = vld [vmem:[%s2959_s2 + $0xf4] sm:$0xf0]  ;;  %v2326_v41 = vor.u32 %v1949_v31, %v1849_v32  ;;  %v1947_v42 = vld [vmem:[%s2959_s2 + $0xcc] sm:$0xf0] }
  0x19   :  { %286 = vmatpush.bf16.msra.mxu1 %v1644_v5  ;;  %315 = vmatpush.bf16.msra.mxu2 %v1648_v6  ;;  %v1831_v40 = vld [vmem:[%s2959_s2 + $0xc0] sm:$0xf]  ;;  %v1950_v43 = vld [vmem:[%s2959_s2 + $0xec] sm:$0xf]  ;;  %v1857_v44 = vld [vmem:[%s2959_s2 + $0xf8] sm:$0xf0]  ;;  %v2343_v47 = vor.u32 %v1952_v39, %v1855_v38 }
  0x1a   :  { %344 = vmatpush.bf16.msra.mxu3 %v1652_v10  ;;  %v1945_v45 = vld [vmem:[%s2959_s2 + $0xc4] sm:$0xf]  ;;  %v1833_v46 = vld [vmem:[%s2959_s2 + $0xd0] sm:$0xf0]  ;;  %v2346_v48 = vor.u32 %v1947_v42, %v1831_v40  ;;  %v1839_v49 = vld [vmem:[%s2959_s2 + $0xc8] sm:$0xf]  ;;  %v2354_v51 = vor.u32 %v1950_v43, %v1857_v44 }
  0x1b   :  { %v1948_v50 = vld [vmem:[%s2959_s2 + $0xd4] sm:$0xf0]  ;;  %v1815_v52 = vld [vmem:[%s2959_s2 + $0xa0] sm:$0xf]  ;;  %v2360_v53 = vor.u32 %v1945_v45, %v1833_v46  ;;  %v1943_v54 = vld [vmem:[%s2959_s2 + $0xac] sm:$0xf0] }
  0x1c   :  { %258 = vmatpush.bf16.msra.mxu0 %v1624_v16  ;;  %v1946_v55 = vld [vmem:[%s2959_s2 + $0xcc] sm:$0xf]  ;;  %v1841_v56 = vld [vmem:[%s2959_s2 + $0xd8] sm:$0xf0]  ;;  %v1941_v57 = vld [vmem:[%s2959_s2 + $0xa4] sm:$0xf]  ;;  %v2378_v59 = vor.u32 %v1948_v50, %v1839_v49  ;;  %v2382_v60 = vor.u32 %v1943_v54, %v1815_v52 }
  0x1d   :  { %287 = vmatpush.bf16.msra.mxu1 %v1628_v18  ;;  %316 = vmatpush.bf16.msra.mxu2 %v1632_v19  ;;  %v1817_v58 = vld [vmem:[%s2959_s2 + $0xb0] sm:$0xf0]  ;;  %v1823_v61 = vld [vmem:[%s2959_s2 + $0xa8] sm:$0xf]  ;;  %v1944_v62 = vld [vmem:[%s2959_s2 + $0xb4] sm:$0xf0]  ;;  %v2390_v63 = vor.u32 %v1946_v55, %v1841_v56 }
  0x1e   :  { %345 = vmatpush.bf16.msra.mxu3 %v1636_v23  ;;  %v1799_v0 = vld [vmem:[%s2959_s2 + $0x80] sm:$0xf]  ;;  %v2396_v1 = vor.u32 %v1941_v57, %v1817_v58  ;;  %v1939_v2 = vld [vmem:[%s2959_s2 + $0x8c] sm:$0xf0]  ;;  %v1942_v3 = vld [vmem:[%s2959_s2 + $0xac] sm:$0xf]  ;;  %v2414_v7 = vor.u32 %v1944_v62, %v1823_v61 }
  0x1f   :  { %v1825_v4 = vld [vmem:[%s2959_s2 + $0xb8] sm:$0xf0]  ;;  %v1937_v5 = vld [vmem:[%s2959_s2 + $0x84] sm:$0xf]  ;;  %v1801_v6 = vld [vmem:[%s2959_s2 + $0x90] sm:$0xf0]  ;;  %v2418_v8 = vor.u32 %v1939_v2, %v1799_v0 }
  0x20   :  { %259 = vmatpush.bf16.msra.mxu0 %v1608_v30  ;;  %v1807_v9 = vld [vmem:[%s2959_s2 + $0x88] sm:$0xf]  ;;  %v1940_v10 = vld [vmem:[%s2959_s2 + $0x94] sm:$0xf0]  ;;  %v2426_v11 = vor.u32 %v1942_v3, %v1825_v4  ;;  %v1783_v12 = vld [vmem:[%s2959_s2 + $0x60] sm:$0xf]  ;;  %v2432_v13 = vor.u32 %v1937_v5, %v1801_v6 }
  0x21   :  { %288 = vmatpush.bf16.msra.mxu1 %v1612_v33  ;;  %317 = vmatpush.bf16.msra.mxu2 %v1616_v34  ;;  %v1935_v14 = vld [vmem:[%s2959_s2 + $0x6c] sm:$0xf0]  ;;  %v1938_v15 = vld [vmem:[%s2959_s2 + $0x8c] sm:$0xf]  ;;  %v1809_v16 = vld [vmem:[%s2959_s2 + $0x98] sm:$0xf0]  ;;  %v2453_v20 = vor.u32 %v1940_v10, %v1807_v9 }
  0x22   :  { %346 = vmatpush.bf16.msra.mxu3 %v1620_v36  ;;  %v1933_v17 = vld [vmem:[%s2959_s2 + $0x64] sm:$0xf]  ;;  %v1785_v18 = vld [vmem:[%s2959_s2 + $0x70] sm:$0xf0]  ;;  %v1886_v19 = vld [vmem:[%s2960_s0 + $0x8] sm:$0xff]  ;;  %v2457_v21 = vor.u32 %v1935_v14, %v1783_v12  ;;  %v2465_v24 = vor.u32 %v1938_v15, %v1809_v16 }
  0x23   :  { %260 = vmatmul.bf16.vlgmr.msra.gmra.mxu0 %v1885_v35  ;;  %v1791_v22 = vld [vmem:[%s2959_s2 + $0x68] sm:$0xf]  ;;  %v1936_v23 = vld [vmem:[%s2959_s2 + $0x74] sm:$0xf0]  ;;  %v1767_v25 = vld [vmem:[%s2959_s2 + $0x40] sm:$0xf]  ;;  %v2471_v26 = vor.u32 %v1933_v17, %v1785_v18 }
  0x24   :  { %596 = vmatpush.bf16.msrb.mxu0 %v2315_v37  ;;  %289 = vmatmul.bf16.vlgmr.msra.gmra.mxu1 %v1885_v35  ;;  %v1931_v27 = vld [vmem:[%s2959_s2 + $0x4c] sm:$0xf0]  ;;  %v1934_v28 = vld [vmem:[%s2959_s2 + $0x6c] sm:$0xf]  ;;  %v1793_v29 = vld [vmem:[%s2959_s2 + $0x78] sm:$0xf0]  ;;  %v2489_v32 = vor.u32 %v1936_v23, %v1791_v22 }
  0x25   :  { %609 = vmatpush.bf16.msrb.mxu1 %v2326_v41  ;;  %318 = vmatmul.bf16.vlgmr.msra.gmra.mxu2 %v1885_v35  ;;  %v1929_v30 = vld [vmem:[%s2959_s2 + $0x44] sm:$0xf]  ;;  %v1769_v31 = vld [vmem:[%s2959_s2 + $0x50] sm:$0xf0]  ;;  %v2493_v33 = vor.u32 %v1931_v27, %v1767_v25  ;;  %v1775_v34 = vld [vmem:[%s2959_s2 + $0x48] sm:$0xf]  ;;  %v2501_v36 = vor.u32 %v1934_v28, %v1793_v29 }
  0x26   :  { %347 = vmatmul.bf16.vlgmr.msra.gmra.mxu3 %v1885_v35  ;;  %622 = vmatpush.bf16.msrb.mxu2 %v2343_v47  ;;  %v1932_v35 = vld [vmem:[%s2959_s2 + $0x54] sm:$0xf0]  ;;  %v2504_v38 = vor.u32 %v1929_v30, %v1769_v31  ;;  %v1751_v40 = vld [vmem:[%s2959_s2 + $0x20] sm:$0xf]  ;;  %v1927_v42 = vld [vmem:[%s2959_s2 + $0x2c] sm:$0xf0] }
  0x27   :  { %635 = vmatpush.bf16.msrb.mxu3 %v2354_v51  ;;  %v2507_v39 = vor.u32 %v1932_v35, %v1775_v34  ;;  %v1925_v43 = vld [vmem:[%s2959_s2 + $0x24] sm:$0xf]  ;;  %v2520_v44 = vor.u32 %v1927_v42, %v1751_v40  ;;  %v1753_v45 = vld [vmem:[%s2959_s2 + $0x30] sm:$0xf0]  ;;  %v1759_v46 = vld [vmem:[%s2959_s2 + $0x28] sm:$0xf] }
  0x28   :  { %597 = vmatpush.bf16.msrb.mxu0 %v2346_v48  ;;  %v1928_v49 = vld [vmem:[%s2959_s2 + $0x34] sm:$0xf0]  ;;  %v2532_v50 = vor.u32 %v1925_v43, %v1753_v45  ;;  %v1930_v52 = vld [vmem:[%s2959_s2 + $0x4c] sm:$0xf]  ;;  %v1777_v54 = vld [vmem:[%s2959_s2 + $0x58] sm:$0xf0] }
  0x29   :  { %610 = vmatpush.bf16.msrb.mxu1 %v2360_v53  ;;  %v1735_v55 = vld [vmem:[%s2959_s2] sm:$0xf]  ;;  %v2543_v56 = vor.u32 %v1930_v52, %v1777_v54  ;;  %v1923_v57 = vld [vmem:[%s2959_s2 + $0xc] sm:$0xf0]  ;;  %v1921_v58 = vld [vmem:[%s2959_s2 + $0x4] sm:$0xf]  ;;  %v2555_v62 = vor.u32 %v1928_v49, %v1759_v46 }
  0x2a   :  { %623 = vmatpush.bf16.msrb.mxu2 %v2378_v59  ;;  %v1737_v61 = vld [vmem:[%s2959_s2 + $0x10] sm:$0xf0]  ;;  %v1926_v0 = vld [vmem:[%s2959_s2 + $0x2c] sm:$0xf]  ;;  %v1761_v2 = vld [vmem:[%s2959_s2 + $0x38] sm:$0xf0]  ;;  %v2565_v3 = vor.u32 %v1923_v57, %v1735_v55 }
  0x2b   :  { %636 = vmatpush.bf16.msrb.mxu3 %v2390_v63  ;;  %v2567_v4 = vor.u32 %v1926_v0, %v1761_v2  ;;  %v1743_v5 = vld [vmem:[%s2959_s2 + $0x8] sm:$0xf]  ;;  %v1924_v6 = vld [vmem:[%s2959_s2 + $0x14] sm:$0xf0]  ;;  %v2576_v9 = vor.u32 %v1921_v58, %v1737_v61  ;;  %v1922_v10 = vld [vmem:[%s2959_s2 + $0xc] sm:$0xf] }
  0x2c   :  { %598 = vmatpush.bf16.msrb.mxu0 %v2382_v60  ;;  %v1745_v12 = vld [vmem:[%s2959_s2 + $0x18] sm:$0xf0]  ;;  %v2585_v14 = vor.u32 %v1924_v6, %v1743_v5  ;;  %v1887_v16 = vld [vmem:[%s2960_s0 + $0x10] sm:$0xff]  ;;  %v2082_v18 = vmov 0   ;;  %v58_v23 = vld [vmem:[%s2961_s3] sm:$0xf] }
  0x2d   :  { %611 = vmatpush.bf16.msrb.mxu1 %v2396_v1  ;;  %v2589_v15 = vor.u32 %v1922_v10, %v1745_v12  ;;  %v1888_v17 = vld [vmem:[%s2960_s0 + $0x18] sm:$0xff]  ;;  %v60_v25 = vperm.slane %v58_v23, 0  ;;  %v61_v28 = vperm.slane %v58_v23, 1  ;;  %v2675_v40 = vperm.slane %v58_v23, 3 }
  0x2e   :  { %624 = vmatpush.bf16.msrb.mxu2 %v2414_v7  ;;  %v62_v42 = vperm.slane %v58_v23, 2 }
  0x2f   :  { %637 = vmatpush.bf16.msrb.mxu3 %v2426_v11 }
  0x30   :  { %599 = vmatpush.bf16.msrb.mxu0 %v2418_v8 }
  0x31   :  { %612 = vmatpush.bf16.msrb.mxu1 %v2432_v13 }
  0x32   :  { %625 = vmatpush.bf16.msrb.mxu2 %v2453_v20 }
  0x33   :  { %638 = vmatpush.bf16.msrb.mxu3 %v2465_v24  ;;  %265 = vmatmul.bf16.gmra.mxu0 %v1886_v19 }
  0x34   :  { %600 = vmatpush.bf16.msrb.mxu0 %v2457_v21  ;;  %294 = vmatmul.bf16.gmra.mxu1 %v1886_v19 }
  0x35   :  { %613 = vmatpush.bf16.msrb.mxu1 %v2471_v26  ;;  %323 = vmatmul.bf16.gmra.mxu2 %v1886_v19 }
  0x36   :  { %352 = vmatmul.bf16.gmra.mxu3 %v1886_v19  ;;  %626 = vmatpush.bf16.msrb.mxu2 %v2489_v32 }
  0x37   :  { %639 = vmatpush.bf16.msrb.mxu3 %v2501_v36 }
  0x38   :  { %601 = vmatpush.bf16.msrb.mxu0 %v2493_v33 }
  0x39   :  { %614 = vmatpush.bf16.msrb.mxu1 %v2504_v38 }
  0x3a   :  { %627 = vmatpush.bf16.msrb.mxu2 %v2507_v39 }
  0x3b   :  { %640 = vmatpush.bf16.msrb.mxu3 %v2543_v56 }
  0x3c   :  { %602 = vmatpush.bf16.msrb.mxu0 %v2520_v44 }
  0x3d   :  { %615 = vmatpush.bf16.msrb.mxu1 %v2532_v50 }
  0x3e   :  { %628 = vmatpush.bf16.msrb.mxu2 %v2555_v62 }
  0x3f   :  { %641 = vmatpush.bf16.msrb.mxu3 %v2567_v4 }
  0x40   :  { %603 = vmatpush.bf16.msrb.mxu0 %v2565_v3 }
  0x41   :  { %616 = vmatpush.bf16.msrb.mxu1 %v2576_v9 }
  0x42   :  { %629 = vmatpush.bf16.msrb.mxu2 %v2585_v14 }
  0x43   :  { %642 = vmatpush.bf16.msrb.mxu3 %v2589_v15  ;;  %270 = vmatmul.bf16.gmra.mxu0 %v1887_v16 }
  0x44   :  { %720 = vmatpush.bf16.msra.mxu0 %v2315_v37  ;;  %299 = vmatmul.bf16.gmra.mxu1 %v1887_v16 }
  0x45   :  { %733 = vmatpush.bf16.msra.mxu1 %v2326_v41  ;;  %328 = vmatmul.bf16.gmra.mxu2 %v1887_v16 }
  0x46   :  { %746 = vmatpush.bf16.msra.mxu2 %v2343_v47  ;;  %357 = vmatmul.bf16.gmra.mxu3 %v1887_v16 }
  0x47   :  { %759 = vmatpush.bf16.msra.mxu3 %v2354_v51 }
  0x48   :  { %721 = vmatpush.bf16.msra.mxu0 %v2346_v48 }
  0x49   :  { %734 = vmatpush.bf16.msra.mxu1 %v2360_v53 }
  0x4a   :  { %747 = vmatpush.bf16.msra.mxu2 %v2378_v59 }
  0x4b   :  { %760 = vmatpush.bf16.msra.mxu3 %v2390_v63 }
  0x4c   :  { %722 = vmatpush.bf16.msra.mxu0 %v2382_v60 }
  0x4d   :  { %735 = vmatpush.bf16.msra.mxu1 %v2396_v1 }
  0x4e   :  { %748 = vmatpush.bf16.msra.mxu2 %v2414_v7 }
  0x4f   :  { %761 = vmatpush.bf16.msra.mxu3 %v2426_v11 }
  0x50   :  { %723 = vmatpush.bf16.msra.mxu0 %v2418_v8 }
  0x51   :  { %736 = vmatpush.bf16.msra.mxu1 %v2432_v13 }
  0x52   :  { %749 = vmatpush.bf16.msra.mxu2 %v2453_v20 }
  0x53   :  { %762 = vmatpush.bf16.msra.mxu3 %v2465_v24  ;;  %275 = vmatmul.bf16.gmra.mxu0 %v1888_v17 }
  0x54   :  { %724 = vmatpush.bf16.msra.mxu0 %v2457_v21  ;;  %304 = vmatmul.bf16.gmra.mxu1 %v1888_v17 }
  0x55   :  { %737 = vmatpush.bf16.msra.mxu1 %v2471_v26  ;;  %333 = vmatmul.bf16.gmra.mxu2 %v1888_v17 }
  0x56   :  { %750 = vmatpush.bf16.msra.mxu2 %v2489_v32  ;;  %362 = vmatmul.bf16.gmra.mxu3 %v1888_v17 }
  0x57   :  { %763 = vmatpush.bf16.msra.mxu3 %v2501_v36 }
  0x58   :  { %725 = vmatpush.bf16.msra.mxu0 %v2493_v33 }
  0x59   :  { %738 = vmatpush.bf16.msra.mxu1 %v2504_v38 }
  0x5a   :  { %751 = vmatpush.bf16.msra.mxu2 %v2507_v39 }
  0x5b   :  { %764 = vmatpush.bf16.msra.mxu3 %v2543_v56 }
  0x5c   :  { %726 = vmatpush.bf16.msra.mxu0 %v2520_v44 }
  0x5d   :  { %739 = vmatpush.bf16.msra.mxu1 %v2532_v50 }
  0x5e   :  { %752 = vmatpush.bf16.msra.mxu2 %v2555_v62 }
  0x5f   :  { %765 = vmatpush.bf16.msra.mxu3 %v2567_v4 }
  0x60   :  { %727 = vmatpush.bf16.msra.mxu0 %v2565_v3 }
  0x61   :  { %740 = vmatpush.bf16.msra.mxu1 %v2576_v9 }
  0x62   :  { %753 = vmatpush.bf16.msra.mxu2 %v2585_v14 }
  0x63   :  { %766 = vmatpush.bf16.msra.mxu3 %v2589_v15  ;;  %604 = vmatmul.bf16.vlgmr.msrb.gmra.mxu0 %v2082_v18 }
  0x64   :  { %617 = vmatmul.bf16.vlgmr.msrb.gmra.mxu1 %v2082_v18  ;;  %844 = vmatpush.bf16.msrb.mxu0 %v2315_v37 }
  0x65   :  { %630 = vmatmul.bf16.vlgmr.msrb.gmra.mxu2 %v2082_v18  ;;  %857 = vmatpush.bf16.msrb.mxu1 %v2326_v41 }
  0x66   :  { %643 = vmatmul.bf16.vlgmr.msrb.gmra.mxu3 %v2082_v18  ;;  %870 = vmatpush.bf16.msrb.mxu2 %v2343_v47 }
  0x67   :  { %883 = vmatpush.bf16.msrb.mxu3 %v2354_v51 }
  0x68   :  { %845 = vmatpush.bf16.msrb.mxu0 %v2346_v48 }
  0x69   :  { %858 = vmatpush.bf16.msrb.mxu1 %v2360_v53 }
  0x6a   :  { %871 = vmatpush.bf16.msrb.mxu2 %v2378_v59 }
  0x6b   :  { %884 = vmatpush.bf16.msrb.mxu3 %v2390_v63 }
  0x6c   :  { %846 = vmatpush.bf16.msrb.mxu0 %v2382_v60 }
  0x6d   :  { %859 = vmatpush.bf16.msrb.mxu1 %v2396_v1 }
  0x6e   :  { %872 = vmatpush.bf16.msrb.mxu2 %v2414_v7 }
  0x6f   :  { %885 = vmatpush.bf16.msrb.mxu3 %v2426_v11 }
  0x70   :  { %847 = vmatpush.bf16.msrb.mxu0 %v2418_v8 }
  0x71   :  { %860 = vmatpush.bf16.msrb.mxu1 %v2432_v13 }
  0x72   :  { %873 = vmatpush.bf16.msrb.mxu2 %v2453_v20 }
  0x73   :  { %886 = vmatpush.bf16.msrb.mxu3 %v2465_v24 }
  0x74   :  { %848 = vmatpush.bf16.msrb.mxu0 %v2457_v21 }
  0x75   :  { %861 = vmatpush.bf16.msrb.mxu1 %v2471_v26 }
  0x76   :  { %874 = vmatpush.bf16.msrb.mxu2 %v2489_v32 }
  0x77   :  { %887 = vmatpush.bf16.msrb.mxu3 %v2501_v36 }
  0x78   :  { %849 = vmatpush.bf16.msrb.mxu0 %v2493_v33 }
  0x79   :  { %862 = vmatpush.bf16.msrb.mxu1 %v2504_v38 }
  0x7a   :  { %875 = vmatpush.bf16.msrb.mxu2 %v2507_v39 }
  0x7b   :  { %888 = vmatpush.bf16.msrb.mxu3 %v2543_v56 }
  0x7c   :  { %850 = vmatpush.bf16.msrb.mxu0 %v2520_v44 }
  0x7d   :  { %863 = vmatpush.bf16.msrb.mxu1 %v2532_v50 }
  0x7e   :  { %876 = vmatpush.bf16.msrb.mxu2 %v2555_v62 }
  0x7f   :  { %889 = vmatpush.bf16.msrb.mxu3 %v2567_v4 }
  0x80   :  { %851 = vmatpush.bf16.msrb.mxu0 %v2565_v3 }
  0x81   :  { %864 = vmatpush.bf16.msrb.mxu1 %v2576_v9 }
  0x82   :  { %877 = vmatpush.bf16.msrb.mxu2 %v2585_v14 }
  0x83   :  { %890 = vmatpush.bf16.msrb.mxu3 %v2589_v15 }
  0xa0   :  { %v261_v19 = vpop.f32.mrf.mxu0 }
  0xa1   :  { %v290_v22 = vpop.f32.mrf.mxu1 }
  0xa8   :  { %v2667_v27 = vpop.f32.mrf.mxu2  ;;  %v263_v30 = vpop.f32.mrf.mxu0 }
  0xa9   :  { %v2669_v29 = vpop.f32.mrf.mxu3  ;;  %v2671_v31 = vadd.f32 %v263_v30, %v60_v25  ;;  %v292_v34 = vpop.f32.mrf.mxu1 }
  0xaa   :  { %v2673_v35 = vadd.f32 %v292_v34, %v61_v28 }
  0xb0   :  { %v321_v43 = vpop.f32.mrf.mxu2  ;;  %v266_v49 = vpop.f32.mrf.mxu0 }
  0xb1   :  { %v2677_v45 = vadd.f32 %v321_v43, %v62_v42  ;;  %v350_v46 = vpop.f32.mrf.mxu3  ;;  %v2682_v54 = vadd.f32 %v266_v49, %v60_v25  ;;  %v295_v55 = vpop.f32.mrf.mxu1 }
  0xb2   :  { %v2680_v52 = vadd.f32 %v350_v46, %v2675_v40  ;;  %v2684_v57 = vadd.f32 %v295_v55, %v61_v28 }
  0xb8   :  { %v324_v58 = vpop.f32.mrf.mxu2  ;;  %v268_v2 = vpop.f32.mrf.mxu0 }
  0xb9   :  { %v2686_v61 = vadd.f32 %v324_v58, %v62_v42  ;;  %v353_v0 = vpop.f32.mrf.mxu3  ;;  %v2691_v6 = vadd.f32 %v268_v2, %v60_v25  ;;  %v297_v10 = vpop.f32.mrf.mxu1 }
  0xba   :  { %v2689_v5 = vadd.f32 %v353_v0, %v2675_v40  ;;  %v2693_v12 = vadd.f32 %v297_v10, %v61_v28 }
  0xbb   :  { %2963 = vst [vmem:[#allocation3_spill] sm:$0xff] %v2686_v61 }
  0xbc   :  { %2964 = vst [vmem:[#allocation4_spill] sm:$0xff] %v2689_v5 }
  0xbd   :  { %2965 = vst [vmem:[#allocation5_spill] sm:$0xff] %v2691_v6 }
  0xbe   :  { %2966 = vst [vmem:[#allocation6_spill] sm:$0xff] %v2693_v12 }
  0xc0   :  { %v326_v16 = vpop.f32.mrf.mxu2  ;;  %v271_v23 = vpop.f32.mrf.mxu0 }
  0xc1   :  { %v2695_v17 = vadd.f32 %v326_v16, %v62_v42  ;;  %v355_v18 = vpop.f32.mrf.mxu3  ;;  %v2700_v34 = vadd.f32 %v271_v23, %v60_v25  ;;  %v300_v43 = vpop.f32.mrf.mxu1 }
  0xc2   :  { %v2698_v30 = vadd.f32 %v355_v18, %v2675_v40  ;;  %v2702_v46 = vadd.f32 %v300_v43, %v61_v28 }
  0xc3   :  { %2967 = vst [vmem:[#allocation7_spill] sm:$0xff] %v2695_v17 }
  0xc4   :  { %2968 = vst [vmem:[#allocation8_spill] sm:$0xff] %v2698_v30 }
  0xc5   :  { %2969 = vst [vmem:[#allocation9_spill] sm:$0xff] %v2700_v34 }
  0xc6   :  { %2970 = vst [vmem:[#allocation10_spill] sm:$0xff] %v2702_v46 }
  0xc8   :  { %v329_v49 = vpop.f32.mrf.mxu2  ;;  %v273_v0 = vpop.f32.mrf.mxu0 }
  0xc9   :  { %v2704_v55 = vadd.f32 %v329_v49, %v62_v42  ;;  %v358_v58 = vpop.f32.mrf.mxu3  ;;  %v2709_v10 = vadd.f32 %v273_v0, %v60_v25  ;;  %v302_v16 = vpop.f32.mrf.mxu1 }
  0xca   :  { %v2707_v2 = vadd.f32 %v358_v58, %v2675_v40  ;;  %v2711_v17 = vadd.f32 %v302_v16, %v61_v28 }
  0xcb   :  { %2971 = vst [vmem:[#allocation11_spill] sm:$0xff] %v2704_v55 }
  0xcc   :  { %2972 = vst [vmem:[#allocation12_spill] sm:$0xff] %v2707_v2 }
  0xcd   :  { %2973 = vst [vmem:[#allocation13_spill] sm:$0xff] %v2709_v10 }
  0xce   :  { %2974 = vst [vmem:[#allocation14_spill] sm:$0xff] %v2711_v17 }
  0xd0   :  { %v331_v18 = vpop.f32.mrf.mxu2  ;;  %v276_v34 = vpop.f32.mrf.mxu0 }
  0xd1   :  { %v2713_v30 = vadd.f32 %v331_v18, %v62_v42  ;;  %v360_v23 = vpop.f32.mrf.mxu3  ;;  %v2718_v49 = vadd.f32 %v276_v34, %v60_v25  ;;  %v305_v55 = vpop.f32.mrf.mxu1  ;;  %v291_v34 = vadd.f32 %v290_v22, %v61_v28 }
  0xd2   :  { %v2716_v43 = vadd.f32 %v360_v23, %v2675_v40  ;;  %v2720_v46 = vadd.f32 %v305_v55, %v61_v28  ;;  %v262_v23 = vadd.f32 %v261_v19, %v60_v25 }
  0xd3   :  { %2975 = vst [vmem:[#allocation15_spill] sm:$0xff] %v2713_v30 }
  0xd4   :  { %2976 = vst [vmem:[#allocation16_spill] sm:$0xff] %v2716_v43 }
  0xd5   :  { %2977 = vst [vmem:[#allocation17_spill] sm:$0xff] %v2718_v49 }
  0xd6   :  { %2978 = vst [vmem:[#allocation18_spill] sm:$0xff] %v2720_v46 }
  0xd8   :  { %v334_v58 = vpop.f32.mrf.mxu2  ;;  %v278_v10 = vpop.f32.mrf.mxu0 }
  0xd9   :  { %v2722_v2 = vadd.f32 %v334_v58, %v62_v42  ;;  %v363_v0 = vpop.f32.mrf.mxu3  ;;  %v2727_v18 = vadd.f32 %v278_v10, %v60_v25  ;;  %v307_v30 = vpop.f32.mrf.mxu1  ;;  %v320_v10 = vadd.f32 %v2667_v27, %v62_v42  ;;  %v349_v27 = vadd.f32 %v2669_v29, %v2675_v40 }
  0xda   :  { %v2725_v16 = vadd.f32 %v363_v0, %v2675_v40  ;;  %v2729_v17 = vadd.f32 %v307_v30, %v61_v28 }
  0xdb   :  { %2979 = vst [vmem:[#allocation19_spill] sm:$0xff] %v2722_v2 }
  0xdc   :  { %2980 = vst [vmem:[#allocation20_spill] sm:$0xff] %v2725_v16 }
  0xdd   :  { %2981 = vst [vmem:[#allocation21_spill] sm:$0xff] %v2727_v18 }
  0xde   :  { %2982 = vst [vmem:[#allocation22_spill] sm:$0xff] %v2729_v17 }
  0xe0   :  { %v336_v43 = vpop.f32.mrf.mxu2  ;;  %v605_v46 = vpop.f32.mrf.mxu0 }
  0xe1   :  { %v2731_v49 = vadd.f32 %v336_v43, %v62_v42  ;;  %v365_v55 = vpop.f32.mrf.mxu3  ;;  %v648_v2 = vadd.f32 %v605_v46, %v262_v23  ;;  %v618_v12 = vpop.f32.mrf.mxu1 }
  0xe2   :  { %v2734_v58 = vadd.f32 %v365_v55, %v2675_v40  ;;  %v649_v6 = vadd.f32 %v618_v12, %v291_v34 }
  0xe3   :  { %2983 = vst [vmem:[#allocation23_spill] sm:$0xff] %v2731_v49  ;;  %v1861_v0 = vmul.f32 -1.442695, %v648_v2 }
  0xe4   :  { %2984 = vst [vmem:[#allocation24_spill] sm:$0xff] %v2734_v58  ;;  %v1862_v16 = vmul.f32 -1.442695, %v649_v6 }
  0xe5   :  { %1954 = vpow2.f32 %v1861_v0 }
  0xe6   :  { %1956 = vpow2.f32 %v1862_v16 }
  0xe8   :  { %v631_v30 = vpop.f32.mrf.mxu2  ;;  %v607_v22 = vpop.f32.mrf.mxu0 }
  0xe9   :  { %v650_v19 = vadd.f32 %v631_v30, %v320_v10  ;;  %v644_v25 = vpop.f32.mrf.mxu3  ;;  %v620_v28 = vpop.f32.mrf.mxu1 }
  0xea   :  { %v651_v16 = vadd.f32 %v644_v25, %v349_v27 }
  0xeb   :  { %v1863_v43 = vmul.f32 -1.442695, %v650_v19  ;;  %v1955_v49 = vpop.eup %1954 }
  0xec   :  { %v1957_v17 = vpop.eup %1956  ;;  %v661_v18 = vadd.f32 1.0, %v1955_v49 }
  0xed   :  { %1958 = vpow2.f32 %v1863_v43  ;;  %v662_v55 = vadd.f32 1.0, %v1957_v17 }
  0xee   :  { %1960 = vrcp.f32 %v661_v18  ;;  %v675_v49 = vand.u32 2147483648, %v661_v18  ;;  %v673_v22 = vand.u32 2147483647, %v661_v18  ;;  %vm669_vm2 = vweird.f32 %v661_v18 }
  0xef   :  { %1962 = vrcp.f32 %v662_v55  ;;  %v690_v17 = vand.u32 2147483648, %v662_v55  ;;  %v688_v43 = vand.u32 2147483647, %v662_v55  ;;  %vm684_vm3 = vweird.f32 %v662_v55 }
  0xf0   :  { %v633_v12 = vpop.f32.mrf.mxu2  ;;  %v676_v25 = vor.u32 1.1754944e-38, %v675_v49  ;;  %vm674_vm5 = vcmp.eq.f32.partialorder %v673_v22, 8.507059e+37 }
  0xf1   :  { %v646_v46 = vpop.f32.mrf.mxu3  ;;  %vm689_vm7 = vcmp.eq.f32.partialorder %v688_v43, 8.507059e+37 }
  0xf3   :  { %v1959_v6 = vpop.eup %1958 }
  0xf4   :  { %v663_v42 = vadd.f32 1.0, %v1959_v6  ;;  %v1961_v2 = vpop.eup %1960  ;;  %v691_v6 = vor.u32 1.1754944e-38, %v690_v17 }
  0xf5   :  { %v1963_v23 = vpop.eup %1962  ;;  %v665_v34 = vmul.f32 %v1961_v2, %v661_v18  ;;  %vm670_vm0 = vweird.f32 %v1961_v2 }
  0xf6   :  { %1964 = vrcp.f32 %v663_v42  ;;  %v680_v0 = vmul.f32 %v1963_v23, %v662_v55  ;;  %vm685_vm1 = vweird.f32 %v1963_v23  ;;  %vm671_vm4 = vmor %vm669_vm2, %vm670_vm0  ;;  %v705_v55 = vand.u32 2147483648, %v663_v42 }
  0xf7   :  { %v666_v10 = vsub.f32 1.0, %v665_v34  ;;  %1966 = vtanh.f32 %v651_v16  ;;  %vm686_vm6 = vmor %vm684_vm3, %vm685_vm1  ;;  %vm699_vm9 = vweird.f32 %v663_v42 }
  0xf8   :  { %v681_v30 = vsub.f32 1.0, %v680_v0  ;;  %v706_v17 = vor.u32 1.1754944e-38, %v705_v55 }
  0xf9   :  { %v667_v19 = vmul.f32 %v1961_v2, %v666_v10 }
  0xfa   :  { %v682_v28 = vmul.f32 %v1963_v23, %v681_v30 }
  0xfb   :  { %v668_v29 = vadd.f32 %v1961_v2, %v667_v19 }
  0xfc   :  { %v1965_v12 = vpop.eup %1964  ;;  %v683_v46 = vadd.f32 %v1963_v23, %v682_v28 }
  0xfd   :  { %v695_v40 = vmul.f32 %v1965_v12, %v663_v42  ;;  %v672_v27 = vsel %vm671_vm4, %v1961_v2, %v668_v29  ;;  %v1967_v16 = vpop.eup %1966  ;;  %vm700_vm8 = vweird.f32 %v1965_v12  ;;  %v703_v2 = vand.u32 2147483647, %v663_v42 }
  0xfe   :  { %v677_v0 = vsel %vm674_vm5, %v676_v25, %v672_v27  ;;  %v687_v10 = vsel %vm686_vm6, %v1963_v23, %v683_v46  ;;  %vm701_vm10 = vmor %vm699_vm9, %vm700_vm8 }
  0xff   :  { %v696_v34 = vsub.f32 1.0, %v695_v40  ;;  %v692_v30 = vsel %vm689_vm7, %v691_v6, %v687_v10  ;;  %v711_v58 = vmul.f32 %v1967_v16, %v677_v0  ;;  %vm704_vm11 = vcmp.eq.f32.partialorder %v703_v2, 8.507059e+37 }
 0x100   :  { %v710_v5 = vmul.f32 0.0, %v692_v30 }
 0x101   :  { %v697_v61 = vmul.f32 %v1965_v12, %v696_v34 }
 0x102   :  { %v2739_v19 = vadd.f32 %v711_v58, %v710_v5 }
 0x103   :  { %v698_v18 = vadd.f32 %v1965_v12, %v697_v61 }
 0x104   :  { %1968 = vtanh.f32 %v2739_v19 }
 0x105   :  { %v702_v49 = vsel %vm701_vm10, %v1965_v12, %v698_v18 }
 0x106   :  { %v707_v23 = vsel %vm704_vm11, %v706_v17, %v702_v49 }
 0x10a   :  { %v1969_v22 = vpop.eup %1968 }
 0x10b   :  { %v714_v28 = vmul.f32 %v1969_v22, %v707_v23 }
 0x10d   :  { %v719_v43 = vpack.c.bf16 %v714_v28, %v714_v28 }
 0x10f   :  { %728 = vmatmul.bf16.vlgmr.msra.gmra.mxu0 %v719_v43  ;;  %741 = vmatmul.bf16.vlgmr.msra.gmra.mxu1 %v719_v43 }
 0x110   :  { %754 = vmatmul.bf16.vlgmr.msra.gmra.mxu2 %v719_v43  ;;  %767 = vmatmul.bf16.vlgmr.msra.gmra.mxu3 %v719_v43 }
 0x111   :  { %968 = vmatpush.bf16.msra.mxu0 %v2315_v37  ;;  %981 = vmatpush.bf16.msra.mxu1 %v2326_v41 }
 0x112   :  { %994 = vmatpush.bf16.msra.mxu2 %v2343_v47  ;;  %1007 = vmatpush.bf16.msra.mxu3 %v2354_v51 }
 0x115   :  { %969 = vmatpush.bf16.msra.mxu0 %v2346_v48  ;;  %982 = vmatpush.bf16.msra.mxu1 %v2360_v53 }
 0x116   :  { %995 = vmatpush.bf16.msra.mxu2 %v2378_v59  ;;  %1008 = vmatpush.bf16.msra.mxu3 %v2390_v63 }
 0x119   :  { %970 = vmatpush.bf16.msra.mxu0 %v2382_v60  ;;  %983 = vmatpush.bf16.msra.mxu1 %v2396_v1 }
 0x11a   :  { %996 = vmatpush.bf16.msra.mxu2 %v2414_v7  ;;  %1009 = vmatpush.bf16.msra.mxu3 %v2426_v11 }
 0x11d   :  { %971 = vmatpush.bf16.msra.mxu0 %v2418_v8  ;;  %984 = vmatpush.bf16.msra.mxu1 %v2432_v13 }
 0x11e   :  { %997 = vmatpush.bf16.msra.mxu2 %v2453_v20  ;;  %1010 = vmatpush.bf16.msra.mxu3 %v2465_v24 }
 0x121   :  { %972 = vmatpush.bf16.msra.mxu0 %v2457_v21  ;;  %985 = vmatpush.bf16.msra.mxu1 %v2471_v26 }
 0x122   :  { %998 = vmatpush.bf16.msra.mxu2 %v2489_v32  ;;  %1011 = vmatpush.bf16.msra.mxu3 %v2501_v36 }
 0x125   :  { %973 = vmatpush.bf16.msra.mxu0 %v2493_v33  ;;  %986 = vmatpush.bf16.msra.mxu1 %v2504_v38 }
 0x126   :  { %999 = vmatpush.bf16.msra.mxu2 %v2507_v39  ;;  %1012 = vmatpush.bf16.msra.mxu3 %v2543_v56 }
 0x129   :  { %974 = vmatpush.bf16.msra.mxu0 %v2520_v44  ;;  %987 = vmatpush.bf16.msra.mxu1 %v2532_v50 }
 0x12a   :  { %1000 = vmatpush.bf16.msra.mxu2 %v2555_v62  ;;  %1013 = vmatpush.bf16.msra.mxu3 %v2567_v4 }
 0x12d   :  { %975 = vmatpush.bf16.msra.mxu0 %v2565_v3  ;;  %988 = vmatpush.bf16.msra.mxu1 %v2576_v9 }
 0x12e   :  { %1001 = vmatpush.bf16.msra.mxu2 %v2585_v14  ;;  %1014 = vmatpush.bf16.msra.mxu3 %v2589_v15 }
 0x18c   :  { %v729_v61 = vpop.f32.mrf.mxu0  ;;  %v742_v5 = vpop.f32.mrf.mxu1 }
 0x18d   :  { %v772_v58 = vadd.f32 %v729_v61, %v2671_v31  ;;  %v773_v42 = vadd.f32 %v742_v5, %v2673_v35 }
 0x18f   :  { %v1864_v12 = vmul.f32 -1.442695, %v772_v58  ;;  %v1865_v29 = vmul.f32 -1.442695, %v773_v42 }
 0x191   :  { %1970 = vpow2.f32 %v1864_v12 }
 0x192   :  { %1972 = vpow2.f32 %v1865_v29 }
 0x193   :  { %v755_v40 = vpop.f32.mrf.mxu2  ;;  %v768_v25 = vpop.f32.mrf.mxu3 }
 0x194   :  { %v774_v46 = vadd.f32 %v755_v40, %v2677_v45  ;;  %v731_v6 = vpop.f32.mrf.mxu0  ;;  %v744_v27 = vpop.f32.mrf.mxu1  ;;  %v775_v49 = vadd.f32 %v768_v25, %v2680_v52 }
 0x196   :  { %v1866_v16 = vmul.f32 -1.442695, %v774_v46 }
 0x197   :  { %v1971_v34 = vpop.eup %1970 }
 0x198   :  { %v1973_v0 = vpop.eup %1972  ;;  %v785_v10 = vadd.f32 1.0, %v1971_v34  ;;  %1974 = vpow2.f32 %v1866_v16 }
 0x199   :  { %v786_v30 = vadd.f32 1.0, %v1973_v0 }
 0x19a   :  { %1976 = vrcp.f32 %v785_v10  ;;  %v799_v43 = vand.u32 2147483648, %v785_v10  ;;  %v797_v58 = vand.u32 2147483647, %v785_v10  ;;  %vm793_vm14 = vweird.f32 %v785_v10 }
 0x19b   :  { %1978 = vrcp.f32 %v786_v30  ;;  %v757_v31 = vpop.f32.mrf.mxu2  ;;  %v770_v35 = vpop.f32.mrf.mxu3  ;;  %v814_v61 = vand.u32 2147483648, %v786_v30  ;;  %v812_v12 = vand.u32 2147483647, %v786_v30  ;;  %vm808_vm15 = vweird.f32 %v786_v30 }
 0x19c   :  { %v800_v25 = vor.u32 1.1754944e-38, %v799_v43  ;;  %vm798_vm2 = vcmp.eq.f32.partialorder %v797_v58, 8.507059e+37 }
 0x19d   :  { %v815_v6 = vor.u32 1.1754944e-38, %v814_v61  ;;  %vm813_vm3 = vcmp.eq.f32.partialorder %v812_v12, 8.507059e+37 }
 0x19e   :  { %v1975_v18 = vpop.eup %1974 }
 0x19f   :  { %v787_v55 = vadd.f32 1.0, %v1975_v18 }
 0x1a0   :  { %v1977_v2 = vpop.eup %1976 }
 0x1a1   :  { %v1979_v17 = vpop.eup %1978  ;;  %v789_v22 = vmul.f32 %v1977_v2, %v785_v10  ;;  %1980 = vrcp.f32 %v787_v55  ;;  %vm794_vm12 = vweird.f32 %v1977_v2  ;;  %vm823_vm5 = vweird.f32 %v787_v55 }
 0x1a2   :  { %v804_v45 = vmul.f32 %v1979_v17, %v786_v30  ;;  %1982 = vtanh.f32 %v775_v49  ;;  %vm809_vm13 = vweird.f32 %v1979_v17  ;;  %vm795_vm0 = vmor %vm793_vm14, %vm794_vm12 }
 0x1a3   :  { %v790_v23 = vsub.f32 1.0, %v789_v22  ;;  %vm810_vm1 = vmor %vm808_vm15, %vm809_vm13 }
 0x1a4   :  { %v805_v28 = vsub.f32 1.0, %v804_v45  ;;  %v829_v45 = vand.u32 2147483648, %v787_v55 }
 0x1a5   :  { %v791_v5 = vmul.f32 %v1977_v2, %v790_v23 }
 0x1a6   :  { %v806_v42 = vmul.f32 %v1979_v17, %v805_v28  ;;  %v830_v28 = vor.u32 1.1754944e-38, %v829_v45 }
 0x1a7   :  { %v1981_v29 = vpop.eup %1980  ;;  %v792_v40 = vadd.f32 %v1977_v2, %v791_v5 }
 0x1a8   :  { %v819_v52 = vmul.f32 %v1981_v29, %v787_v55  ;;  %v807_v46 = vadd.f32 %v1979_v17, %v806_v42  ;;  %v1983_v16 = vpop.eup %1982  ;;  %vm824_vm4 = vweird.f32 %v1981_v29 }
 0x1a9   :  { %v796_v27 = vsel %vm795_vm0, %v1977_v2, %v792_v40  ;;  %v827_v2 = vand.u32 2147483647, %v787_v55  ;;  %vm825_vm6 = vmor %vm823_vm5, %vm824_vm4 }
 0x1aa   :  { %v820_v34 = vsub.f32 1.0, %v819_v52  ;;  %v801_v0 = vsel %vm798_vm2, %v800_v25, %v796_v27  ;;  %v811_v31 = vsel %vm810_vm1, %v1979_v17, %v807_v46  ;;  %v2985_v25 = vld [vmem:[#allocation3_spill] sm:$0xff] }
 0x1ab   :  { %v816_v35 = vsel %vm813_vm3, %v815_v6, %v811_v31  ;;  %v835_v18 = vmul.f32 %v1983_v16, %v801_v0  ;;  %vm828_vm7 = vcmp.eq.f32.partialorder %v827_v2, 8.507059e+37 }
 0x1ac   :  { %v834_v49 = vmul.f32 %v816_v35, %v2739_v19  ;;  %v821_v22 = vmul.f32 %v1981_v29, %v820_v34 }
 0x1ae   :  { %v2779_v10 = vadd.f32 %v835_v18, %v834_v49  ;;  %v822_v30 = vadd.f32 %v1981_v29, %v821_v22 }
 0x1b0   :  { %1984 = vtanh.f32 %v2779_v10  ;;  %v826_v23 = vsel %vm825_vm6, %v1981_v29, %v822_v30  ;;  %v2986_v30 = vld [vmem:[#allocation4_spill] sm:$0xff] }
 0x1b1   :  { %v831_v43 = vsel %vm828_vm7, %v830_v28, %v826_v23 }
 0x1b6   :  { %v1985_v17 = vpop.eup %1984 }
 0x1b7   :  { %v838_v61 = vmul.f32 %v1985_v17, %v831_v43 }
 0x1b9   :  { %v843_v5 = vpack.c.bf16 %v838_v61, %v838_v61 }
 0x1bb   :  { %852 = vmatmul.bf16.vlgmr.msrb.gmra.mxu0 %v843_v5  ;;  %865 = vmatmul.bf16.vlgmr.msrb.gmra.mxu1 %v843_v5 }
 0x1bc   :  { %878 = vmatmul.bf16.vlgmr.msrb.gmra.mxu2 %v843_v5  ;;  %891 = vmatmul.bf16.vlgmr.msrb.gmra.mxu3 %v843_v5 }
 0x1bd   :  { %1092 = vmatpush.bf16.msrb.mxu0 %v2315_v37  ;;  %1105 = vmatpush.bf16.msrb.mxu1 %v2326_v41 }
 0x1be   :  { %1118 = vmatpush.bf16.msrb.mxu2 %v2343_v47  ;;  %1131 = vmatpush.bf16.msrb.mxu3 %v2354_v51 }
 0x1c1   :  { %1093 = vmatpush.bf16.msrb.mxu0 %v2346_v48  ;;  %1106 = vmatpush.bf16.msrb.mxu1 %v2360_v53 }
 0x1c2   :  { %1119 = vmatpush.bf16.msrb.mxu2 %v2378_v59  ;;  %1132 = vmatpush.bf16.msrb.mxu3 %v2390_v63 }
 0x1c5   :  { %1094 = vmatpush.bf16.msrb.mxu0 %v2382_v60  ;;  %1107 = vmatpush.bf16.msrb.mxu1 %v2396_v1 }
 0x1c6   :  { %1120 = vmatpush.bf16.msrb.mxu2 %v2414_v7  ;;  %1133 = vmatpush.bf16.msrb.mxu3 %v2426_v11 }
 0x1c9   :  { %1095 = vmatpush.bf16.msrb.mxu0 %v2418_v8  ;;  %1108 = vmatpush.bf16.msrb.mxu1 %v2432_v13 }
 0x1ca   :  { %1121 = vmatpush.bf16.msrb.mxu2 %v2453_v20  ;;  %1134 = vmatpush.bf16.msrb.mxu3 %v2465_v24 }
 0x1cd   :  { %1096 = vmatpush.bf16.msrb.mxu0 %v2457_v21  ;;  %1109 = vmatpush.bf16.msrb.mxu1 %v2471_v26 }
 0x1ce   :  { %1122 = vmatpush.bf16.msrb.mxu2 %v2489_v32  ;;  %1135 = vmatpush.bf16.msrb.mxu3 %v2501_v36 }
 0x1d1   :  { %1097 = vmatpush.bf16.msrb.mxu0 %v2493_v33  ;;  %1110 = vmatpush.bf16.msrb.mxu1 %v2504_v38 }
 0x1d2   :  { %1123 = vmatpush.bf16.msrb.mxu2 %v2507_v39  ;;  %1136 = vmatpush.bf16.msrb.mxu3 %v2543_v56 }
 0x1d5   :  { %1098 = vmatpush.bf16.msrb.mxu0 %v2520_v44  ;;  %1111 = vmatpush.bf16.msrb.mxu1 %v2532_v50 }
 0x1d6   :  { %1124 = vmatpush.bf16.msrb.mxu2 %v2555_v62  ;;  %1137 = vmatpush.bf16.msrb.mxu3 %v2567_v4 }
 0x1d9   :  { %1099 = vmatpush.bf16.msrb.mxu0 %v2565_v3  ;;  %1112 = vmatpush.bf16.msrb.mxu1 %v2576_v9 }
 0x1da   :  { %1125 = vmatpush.bf16.msrb.mxu2 %v2585_v14  ;;  %1138 = vmatpush.bf16.msrb.mxu3 %v2589_v15 }
 0x238   :  { %v853_v19 = vpop.f32.mrf.mxu0  ;;  %v866_v55 = vpop.f32.mrf.mxu1 }
 0x239   :  { %v896_v58 = vadd.f32 %v853_v19, %v2682_v54  ;;  %v897_v42 = vadd.f32 %v866_v55, %v2684_v57 }
 0x23b   :  { %v1867_v12 = vmul.f32 -1.442695, %v896_v58  ;;  %v1868_v29 = vmul.f32 -1.442695, %v897_v42 }
 0x23d   :  { %1986 = vpow2.f32 %v1867_v12 }
 0x23e   :  { %1988 = vpow2.f32 %v1868_v29 }
 0x23f   :  { %v879_v40 = vpop.f32.mrf.mxu2  ;;  %v892_v52 = vpop.f32.mrf.mxu3 }
 0x240   :  { %v898_v46 = vadd.f32 %v879_v40, %v2985_v25  ;;  %v855_v6 = vpop.f32.mrf.mxu0  ;;  %v868_v27 = vpop.f32.mrf.mxu1  ;;  %v899_v45 = vadd.f32 %v892_v52, %v2986_v30 }
 0x242   :  { %v1869_v16 = vmul.f32 -1.442695, %v898_v46 }
 0x243   :  { %v1987_v34 = vpop.eup %1986 }
 0x244   :  { %v1989_v0 = vpop.eup %1988  ;;  %v909_v31 = vadd.f32 1.0, %v1987_v34  ;;  %1990 = vpow2.f32 %v1869_v16 }
 0x245   :  { %v910_v35 = vadd.f32 1.0, %v1989_v0 }
 0x246   :  { %1992 = vrcp.f32 %v909_v31  ;;  %v923_v61 = vand.u32 2147483648, %v909_v31  ;;  %v921_v55 = vand.u32 2147483647, %v909_v31  ;;  %vm917_vm10 = vweird.f32 %v909_v31 }
 0x247   :  { %1994 = vrcp.f32 %v910_v35  ;;  %v881_v54 = vpop.f32.mrf.mxu2  ;;  %v894_v57 = vpop.f32.mrf.mxu3  ;;  %v938_v5 = vand.u32 2147483648, %v910_v35  ;;  %v936_v42 = vand.u32 2147483647, %v910_v35  ;;  %vm932_vm11 = vweird.f32 %v910_v35 }
 0x248   :  { %v924_v52 = vor.u32 1.1754944e-38, %v923_v61  ;;  %vm922_vm14 = vcmp.eq.f32.partialorder %v921_v55, 8.507059e+37  ;;  %v2988_v55 = vld [vmem:[#allocation6_spill] sm:$0xff] }
 0x249   :  { %v939_v46 = vor.u32 1.1754944e-38, %v938_v5  ;;  %vm937_vm15 = vcmp.eq.f32.partialorder %v936_v42, 8.507059e+37  ;;  %v2987_v5 = vld [vmem:[#allocation5_spill] sm:$0xff] }
 0x24a   :  { %v1991_v18 = vpop.eup %1990 }
 0x24b   :  { %v911_v49 = vadd.f32 1.0, %v1991_v18 }
 0x24c   :  { %v1993_v22 = vpop.eup %1992 }
 0x24d   :  { %v1995_v2 = vpop.eup %1994  ;;  %v913_v23 = vmul.f32 %v1993_v22, %v909_v31  ;;  %1996 = vrcp.f32 %v911_v49  ;;  %vm918_vm8 = vweird.f32 %v1993_v22  ;;  %vm947_vm1 = vweird.f32 %v911_v49 }
 0x24e   :  { %v928_v28 = vmul.f32 %v1995_v2, %v910_v35  ;;  %1998 = vtanh.f32 %v899_v45  ;;  %vm933_vm9 = vweird.f32 %v1995_v2  ;;  %vm919_vm12 = vmor %vm917_vm10, %vm918_vm8  ;;  %v953_v45 = vand.u32 2147483648, %v911_v49 }
 0x24f   :  { %v914_v17 = vsub.f32 1.0, %v913_v23  ;;  %vm934_vm13 = vmor %vm932_vm11, %vm933_vm9 }
 0x250   :  { %v929_v43 = vsub.f32 1.0, %v928_v28  ;;  %v954_v28 = vor.u32 1.1754944e-38, %v953_v45 }
 0x251   :  { %v915_v19 = vmul.f32 %v1993_v22, %v914_v17 }
 0x252   :  { %v930_v58 = vmul.f32 %v1995_v2, %v929_v43 }
 0x253   :  { %v1997_v12 = vpop.eup %1996  ;;  %v916_v29 = vadd.f32 %v1993_v22, %v915_v19 }
 0x254   :  { %v943_v40 = vmul.f32 %v1997_v12, %v911_v49  ;;  %v931_v25 = vadd.f32 %v1995_v2, %v930_v58  ;;  %v1999_v27 = vpop.eup %1998  ;;  %vm948_vm0 = vweird.f32 %v1997_v12 }
 0x255   :  { %v920_v6 = vsel %vm919_vm12, %v1993_v22, %v916_v29  ;;  %v951_v22 = vand.u32 2147483647, %v911_v49  ;;  %vm949_vm2 = vmor %vm947_vm1, %vm948_vm0 }
 0x256   :  { %v944_v16 = vsub.f32 1.0, %v943_v40  ;;  %v925_v34 = vsel %vm922_vm14, %v924_v52, %v920_v6  ;;  %v935_v0 = vsel %vm934_vm13, %v1995_v2, %v931_v25  ;;  %v2989_v52 = vld [vmem:[#allocation7_spill] sm:$0xff] }
 0x257   :  { %v940_v54 = vsel %vm937_vm15, %v939_v46, %v935_v0  ;;  %v959_v57 = vmul.f32 %v1999_v27, %v925_v34  ;;  %vm952_vm3 = vcmp.eq.f32.partialorder %v951_v22, 8.507059e+37  ;;  %v2990_v22 = vld [vmem:[#allocation8_spill] sm:$0xff] }
 0x258   :  { %v958_v18 = vmul.f32 %v940_v54, %v2779_v10  ;;  %v945_v30 = vmul.f32 %v1997_v12, %v944_v16 }
 0x25a   :  { %v2819_v31 = vadd.f32 %v959_v57, %v958_v18  ;;  %v946_v35 = vadd.f32 %v1997_v12, %v945_v30 }
 0x25c   :  { %2000 = vtanh.f32 %v2819_v31  ;;  %v950_v23 = vsel %vm949_vm2, %v1997_v12, %v946_v35 }
 0x25d   :  { %v955_v17 = vsel %vm952_vm3, %v954_v28, %v950_v23 }
 0x262   :  { %v2001_v2 = vpop.eup %2000 }
 0x263   :  { %v962_v43 = vmul.f32 %v2001_v2, %v955_v17 }
 0x265   :  { %v967_v61 = vpack.c.bf16 %v962_v43, %v962_v43 }
 0x267   :  { %976 = vmatmul.bf16.vlgmr.msra.gmra.mxu0 %v967_v61  ;;  %989 = vmatmul.bf16.vlgmr.msra.gmra.mxu1 %v967_v61 }
 0x268   :  { %1002 = vmatmul.bf16.vlgmr.msra.gmra.mxu2 %v967_v61  ;;  %1015 = vmatmul.bf16.vlgmr.msra.gmra.mxu3 %v967_v61 }
 0x269   :  { %1216 = vmatpush.bf16.msra.mxu0 %v2315_v37  ;;  %1229 = vmatpush.bf16.msra.mxu1 %v2326_v41 }
 0x26a   :  { %1242 = vmatpush.bf16.msra.mxu2 %v2343_v47  ;;  %1255 = vmatpush.bf16.msra.mxu3 %v2354_v51 }
 0x26d   :  { %1217 = vmatpush.bf16.msra.mxu0 %v2346_v48  ;;  %1230 = vmatpush.bf16.msra.mxu1 %v2360_v53 }
 0x26e   :  { %1243 = vmatpush.bf16.msra.mxu2 %v2378_v59  ;;  %1256 = vmatpush.bf16.msra.mxu3 %v2390_v63 }
 0x271   :  { %1218 = vmatpush.bf16.msra.mxu0 %v2382_v60  ;;  %1231 = vmatpush.bf16.msra.mxu1 %v2396_v1 }
 0x272   :  { %1244 = vmatpush.bf16.msra.mxu2 %v2414_v7  ;;  %1257 = vmatpush.bf16.msra.mxu3 %v2426_v11 }
 0x275   :  { %1219 = vmatpush.bf16.msra.mxu0 %v2418_v8  ;;  %1232 = vmatpush.bf16.msra.mxu1 %v2432_v13 }
 0x276   :  { %1245 = vmatpush.bf16.msra.mxu2 %v2453_v20  ;;  %1258 = vmatpush.bf16.msra.mxu3 %v2465_v24 }
 0x279   :  { %1220 = vmatpush.bf16.msra.mxu0 %v2457_v21  ;;  %1233 = vmatpush.bf16.msra.mxu1 %v2471_v26 }
 0x27a   :  { %1246 = vmatpush.bf16.msra.mxu2 %v2489_v32  ;;  %1259 = vmatpush.bf16.msra.mxu3 %v2501_v36 }
 0x27d   :  { %1221 = vmatpush.bf16.msra.mxu0 %v2493_v33  ;;  %1234 = vmatpush.bf16.msra.mxu1 %v2504_v38 }
 0x27e   :  { %1247 = vmatpush.bf16.msra.mxu2 %v2507_v39  ;;  %1260 = vmatpush.bf16.msra.mxu3 %v2543_v56 }
 0x281   :  { %1222 = vmatpush.bf16.msra.mxu0 %v2520_v44  ;;  %1235 = vmatpush.bf16.msra.mxu1 %v2532_v50 }
 0x282   :  { %1248 = vmatpush.bf16.msra.mxu2 %v2555_v62  ;;  %1261 = vmatpush.bf16.msra.mxu3 %v2567_v4 }
 0x285   :  { %1223 = vmatpush.bf16.msra.mxu0 %v2565_v3  ;;  %1236 = vmatpush.bf16.msra.mxu1 %v2576_v9 }
 0x286   :  { %1249 = vmatpush.bf16.msra.mxu2 %v2585_v14  ;;  %1262 = vmatpush.bf16.msra.mxu3 %v2589_v15 }
 0x2e4   :  { %v977_v10 = vpop.f32.mrf.mxu0  ;;  %v990_v49 = vpop.f32.mrf.mxu1 }
 0x2e5   :  { %v1020_v19 = vadd.f32 %v977_v10, %v2987_v5  ;;  %v1021_v58 = vadd.f32 %v990_v49, %v2988_v55 }
 0x2e7   :  { %v1870_v42 = vmul.f32 -1.442695, %v1020_v19  ;;  %v1871_v12 = vmul.f32 -1.442695, %v1021_v58 }
 0x2e9   :  { %2002 = vpow2.f32 %v1870_v42 }
 0x2ea   :  { %2004 = vpow2.f32 %v1871_v12 }
 0x2eb   :  { %v1003_v29 = vpop.f32.mrf.mxu2  ;;  %v1016_v40 = vpop.f32.mrf.mxu3 }
 0x2ec   :  { %v1022_v25 = vadd.f32 %v1003_v29, %v2989_v52  ;;  %v979_v46 = vpop.f32.mrf.mxu0  ;;  %v992_v6 = vpop.f32.mrf.mxu1  ;;  %v1023_v23 = vadd.f32 %v1016_v40, %v2990_v22 }
 0x2ee   :  { %v1872_v27 = vmul.f32 -1.442695, %v1022_v25 }
 0x2ef   :  { %v2003_v16 = vpop.eup %2002 }
 0x2f0   :  { %v2005_v34 = vpop.eup %2004  ;;  %v1033_v0 = vadd.f32 1.0, %v2003_v16  ;;  %2006 = vpow2.f32 %v1872_v27 }
 0x2f1   :  { %v1034_v54 = vadd.f32 1.0, %v2005_v34 }
 0x2f2   :  { %2008 = vrcp.f32 %v1033_v0  ;;  %v1047_v10 = vand.u32 2147483648, %v1033_v0  ;;  %v1045_v19 = vand.u32 2147483647, %v1033_v0  ;;  %vm1041_vm6 = vweird.f32 %v1033_v0 }
 0x2f3   :  { %2010 = vrcp.f32 %v1034_v54  ;;  %v1005_v57 = vpop.f32.mrf.mxu2  ;;  %v1018_v18 = vpop.f32.mrf.mxu3  ;;  %v1062_v49 = vand.u32 2147483648, %v1034_v54  ;;  %v1060_v58 = vand.u32 2147483647, %v1034_v54  ;;  %vm1056_vm7 = vweird.f32 %v1034_v54 }
 0x2f4   :  { %v1048_v40 = vor.u32 1.1754944e-38, %v1047_v10  ;;  %vm1046_vm10 = vcmp.eq.f32.partialorder %v1045_v19, 8.507059e+37  ;;  %v2992_v19 = vld [vmem:[#allocation10_spill] sm:$0xff] }
 0x2f5   :  { %v1063_v25 = vor.u32 1.1754944e-38, %v1062_v49  ;;  %vm1061_vm11 = vcmp.eq.f32.partialorder %v1060_v58, 8.507059e+37  ;;  %v2991_v49 = vld [vmem:[#allocation9_spill] sm:$0xff] }
 0x2f6   :  { %v2007_v30 = vpop.eup %2006 }
 0x2f7   :  { %v1035_v35 = vadd.f32 1.0, %v2007_v30 }
 0x2f8   :  { %v2009_v45 = vpop.eup %2008 }
 0x2f9   :  { %v2011_v28 = vpop.eup %2010  ;;  %v1037_v2 = vmul.f32 %v2009_v45, %v1033_v0  ;;  %2012 = vrcp.f32 %v1035_v35  ;;  %vm1042_vm4 = vweird.f32 %v2009_v45  ;;  %vm1071_vm13 = vweird.f32 %v1035_v35 }
 0x2fa   :  { %v1052_v17 = vmul.f32 %v2011_v28, %v1034_v54  ;;  %2014 = vtanh.f32 %v1023_v23  ;;  %vm1057_vm5 = vweird.f32 %v2011_v28  ;;  %vm1043_vm8 = vmor %vm1041_vm6, %vm1042_vm4  ;;  %v1077_v23 = vand.u32 2147483648, %v1035_v35 }
 0x2fb   :  { %v1038_v43 = vsub.f32 1.0, %v1037_v2  ;;  %vm1058_vm9 = vmor %vm1056_vm7, %vm1057_vm5 }
 0x2fc   :  { %v1053_v61 = vsub.f32 1.0, %v1052_v17  ;;  %v1078_v17 = vor.u32 1.1754944e-38, %v1077_v23 }
 0x2fd   :  { %v1039_v5 = vmul.f32 %v2009_v45, %v1038_v43 }
 0x2fe   :  { %v1054_v55 = vmul.f32 %v2011_v28, %v1053_v61 }
 0x2ff   :  { %v2013_v42 = vpop.eup %2012  ;;  %v1040_v12 = vadd.f32 %v2009_v45, %v1039_v5 }
 0x300   :  { %v1067_v29 = vmul.f32 %v2013_v42, %v1035_v35  ;;  %v1055_v52 = vadd.f32 %v2011_v28, %v1054_v55  ;;  %v2015_v6 = vpop.eup %2014  ;;  %vm1072_vm12 = vweird.f32 %v2013_v42 }
 0x301   :  { %v1044_v46 = vsel %vm1043_vm8, %v2009_v45, %v1040_v12  ;;  %v1075_v45 = vand.u32 2147483647, %v1035_v35  ;;  %vm1073_vm14 = vmor %vm1071_vm13, %vm1072_vm12 }
 0x302   :  { %v1068_v27 = vsub.f32 1.0, %v1067_v29  ;;  %v1049_v16 = vsel %vm1046_vm10, %v1048_v40, %v1044_v46  ;;  %v1059_v34 = vsel %vm1058_vm9, %v2011_v28, %v1055_v52  ;;  %v2993_v40 = vld [vmem:[#allocation11_spill] sm:$0xff] }
 0x303   :  { %v1064_v57 = vsel %vm1061_vm11, %v1063_v25, %v1059_v34  ;;  %v1083_v18 = vmul.f32 %v2015_v6, %v1049_v16  ;;  %vm1076_vm15 = vcmp.eq.f32.partialorder %v1075_v45, 8.507059e+37  ;;  %v2994_v45 = vld [vmem:[#allocation12_spill] sm:$0xff] }
 0x304   :  { %v1082_v30 = vmul.f32 %v1064_v57, %v2819_v31  ;;  %v1069_v22 = vmul.f32 %v2013_v42, %v1068_v27 }
 0x306   :  { %v2859_v0 = vadd.f32 %v1083_v18, %v1082_v30  ;;  %v1070_v54 = vadd.f32 %v2013_v42, %v1069_v22 }
 0x308   :  { %2016 = vtanh.f32 %v2859_v0  ;;  %v1074_v2 = vsel %vm1073_vm14, %v2013_v42, %v1070_v54 }
 0x309   :  { %v1079_v43 = vsel %vm1076_vm15, %v1078_v17, %v1074_v2 }
 0x30e   :  { %v2017_v28 = vpop.eup %2016 }
 0x30f   :  { %v1086_v61 = vmul.f32 %v2017_v28, %v1079_v43 }
 0x311   :  { %v1091_v10 = vpack.c.bf16 %v1086_v61, %v1086_v61 }
 0x313   :  { %1100 = vmatmul.bf16.vlgmr.msrb.gmra.mxu0 %v1091_v10  ;;  %1113 = vmatmul.bf16.vlgmr.msrb.gmra.mxu1 %v1091_v10 }
 0x314   :  { %1126 = vmatmul.bf16.vlgmr.msrb.gmra.mxu2 %v1091_v10  ;;  %1139 = vmatmul.bf16.vlgmr.msrb.gmra.mxu3 %v1091_v10 }
 0x315   :  { %1340 = vmatpush.bf16.msrb.mxu0 %v2315_v37  ;;  %1353 = vmatpush.bf16.msrb.mxu1 %v2326_v41 }
 0x316   :  { %1366 = vmatpush.bf16.msrb.mxu2 %v2343_v47  ;;  %1379 = vmatpush.bf16.msrb.mxu3 %v2354_v51 }
 0x319   :  { %1341 = vmatpush.bf16.msrb.mxu0 %v2346_v48  ;;  %1354 = vmatpush.bf16.msrb.mxu1 %v2360_v53 }
 0x31a   :  { %1367 = vmatpush.bf16.msrb.mxu2 %v2378_v59  ;;  %1380 = vmatpush.bf16.msrb.mxu3 %v2390_v63 }
 0x31d   :  { %1342 = vmatpush.bf16.msrb.mxu0 %v2382_v60  ;;  %1355 = vmatpush.bf16.msrb.mxu1 %v2396_v1 }
 0x31e   :  { %1368 = vmatpush.bf16.msrb.mxu2 %v2414_v7  ;;  %1381 = vmatpush.bf16.msrb.mxu3 %v2426_v11 }
 0x321   :  { %1343 = vmatpush.bf16.msrb.mxu0 %v2418_v8  ;;  %1356 = vmatpush.bf16.msrb.mxu1 %v2432_v13 }
 0x322   :  { %1369 = vmatpush.bf16.msrb.mxu2 %v2453_v20  ;;  %1382 = vmatpush.bf16.msrb.mxu3 %v2465_v24 }
 0x325   :  { %1344 = vmatpush.bf16.msrb.mxu0 %v2457_v21  ;;  %1357 = vmatpush.bf16.msrb.mxu1 %v2471_v26 }
 0x326   :  { %1370 = vmatpush.bf16.msrb.mxu2 %v2489_v32  ;;  %1383 = vmatpush.bf16.msrb.mxu3 %v2501_v36 }
 0x329   :  { %1345 = vmatpush.bf16.msrb.mxu0 %v2493_v33  ;;  %1358 = vmatpush.bf16.msrb.mxu1 %v2504_v38 }
 0x32a   :  { %1371 = vmatpush.bf16.msrb.mxu2 %v2507_v39  ;;  %1384 = vmatpush.bf16.msrb.mxu3 %v2543_v56 }
 0x32d   :  { %1346 = vmatpush.bf16.msrb.mxu0 %v2520_v44  ;;  %1359 = vmatpush.bf16.msrb.mxu1 %v2532_v50 }
 0x32e   :  { %1372 = vmatpush.bf16.msrb.mxu2 %v2555_v62  ;;  %1385 = vmatpush.bf16.msrb.mxu3 %v2567_v4 }
 0x331   :  { %1347 = vmatpush.bf16.msrb.mxu0 %v2565_v3  ;;  %1360 = vmatpush.bf16.msrb.mxu1 %v2576_v9 }
 0x332   :  { %1373 = vmatpush.bf16.msrb.mxu2 %v2585_v14  ;;  %1386 = vmatpush.bf16.msrb.mxu3 %v2589_v15 }
 0x390   :  { %v1101_v31 = vpop.f32.mrf.mxu0  ;;  %v1114_v35 = vpop.f32.mrf.mxu1 }
 0x391   :  { %v1144_v5 = vadd.f32 %v1101_v31, %v2991_v49  ;;  %v1145_v55 = vadd.f32 %v1114_v35, %v2992_v19 }
 0x393   :  { %v1873_v58 = vmul.f32 -1.442695, %v1144_v5  ;;  %v1874_v42 = vmul.f32 -1.442695, %v1145_v55 }
 0x395   :  { %2018 = vpow2.f32 %v1873_v58 }
 0x396   :  { %2020 = vpow2.f32 %v1874_v42 }
 0x397   :  { %v1127_v12 = vpop.f32.mrf.mxu2  ;;  %v1140_v29 = vpop.f32.mrf.mxu3 }
 0x398   :  { %v1146_v52 = vadd.f32 %v1127_v12, %v2993_v40  ;;  %v1103_v25 = vpop.f32.mrf.mxu0  ;;  %v1116_v46 = vpop.f32.mrf.mxu1  ;;  %v1147_v2 = vadd.f32 %v1140_v29, %v2994_v45 }
 0x39a   :  { %v1875_v6 = vmul.f32 -1.442695, %v1146_v52 }
 0x39b   :  { %v2019_v27 = vpop.eup %2018 }
 0x39c   :  { %v2021_v16 = vpop.eup %2020  ;;  %v1157_v34 = vadd.f32 1.0, %v2019_v27  ;;  %2022 = vpow2.f32 %v1875_v6 }
 0x39d   :  { %v1158_v57 = vadd.f32 1.0, %v2021_v16 }
 0x39e   :  { %2024 = vrcp.f32 %v1157_v34  ;;  %v1171_v31 = vand.u32 2147483648, %v1157_v34  ;;  %v1169_v5 = vand.u32 2147483647, %v1157_v34  ;;  %vm1165_vm2 = vweird.f32 %v1157_v34 }
 0x39f   :  { %2026 = vrcp.f32 %v1158_v57  ;;  %v1129_v18 = vpop.f32.mrf.mxu2  ;;  %v1142_v30 = vpop.f32.mrf.mxu3  ;;  %v1186_v35 = vand.u32 2147483648, %v1158_v57  ;;  %v1184_v55 = vand.u32 2147483647, %v1158_v57  ;;  %vm1180_vm3 = vweird.f32 %v1158_v57 }
 0x3a0   :  { %v1172_v29 = vor.u32 1.1754944e-38, %v1171_v31  ;;  %vm1170_vm6 = vcmp.eq.f32.partialorder %v1169_v5, 8.507059e+37 }
 0x3a1   :  { %v1187_v52 = vor.u32 1.1754944e-38, %v1186_v35  ;;  %vm1185_vm7 = vcmp.eq.f32.partialorder %v1184_v55, 8.507059e+37 }
 0x3a2   :  { %v2023_v22 = vpop.eup %2022 }
 0x3a3   :  { %v1159_v54 = vadd.f32 1.0, %v2023_v22 }
 0x3a4   :  { %v2025_v23 = vpop.eup %2024 }
 0x3a5   :  { %v2027_v17 = vpop.eup %2026  ;;  %v1161_v28 = vmul.f32 %v2025_v23, %v1157_v34  ;;  %2028 = vrcp.f32 %v1159_v54  ;;  %vm1166_vm0 = vweird.f32 %v2025_v23  ;;  %vm1195_vm9 = vweird.f32 %v1159_v54 }
 0x3a6   :  { %v1176_v43 = vmul.f32 %v2027_v17, %v1158_v57  ;;  %2030 = vtanh.f32 %v1147_v2  ;;  %vm1181_vm1 = vweird.f32 %v2027_v17  ;;  %vm1167_vm4 = vmor %vm1165_vm2, %vm1166_vm0  ;;  %v1201_v2 = vand.u32 2147483648, %v1159_v54 }
 0x3a7   :  { %v1162_v61 = vsub.f32 1.0, %v1161_v28  ;;  %vm1182_vm5 = vmor %vm1180_vm3, %vm1181_vm1 }
 0x3a8   :  { %v1177_v10 = vsub.f32 1.0, %v1176_v43  ;;  %v1202_v43 = vor.u32 1.1754944e-38, %v1201_v2 }
 0x3a9   :  { %v1163_v49 = vmul.f32 %v2025_v23, %v1162_v61 }
 0x3aa   :  { %v1178_v19 = vmul.f32 %v2027_v17, %v1177_v10 }
 0x3ab   :  { %v2029_v58 = vpop.eup %2028  ;;  %v1164_v42 = vadd.f32 %v2025_v23, %v1163_v49 }
 0x3ac   :  { %v1191_v12 = vmul.f32 %v2029_v58, %v1159_v54  ;;  %v1179_v40 = vadd.f32 %v2027_v17, %v1178_v19  ;;  %v2031_v46 = vpop.eup %2030  ;;  %vm1196_vm8 = vweird.f32 %v2029_v58 }
 0x3ad   :  { %v1168_v25 = vsel %vm1167_vm4, %v2025_v23, %v1164_v42  ;;  %v1199_v23 = vand.u32 2147483647, %v1159_v54  ;;  %vm1197_vm10 = vmor %vm1195_vm9, %vm1196_vm8 }
 0x3ae   :  { %v1192_v6 = vsub.f32 1.0, %v1191_v12  ;;  %v1173_v27 = vsel %vm1170_vm6, %v1172_v29, %v1168_v25  ;;  %v1183_v16 = vsel %vm1182_vm5, %v2027_v17, %v1179_v40 }
 0x3af   :  { %v1188_v18 = vsel %vm1185_vm7, %v1187_v52, %v1183_v16  ;;  %v1207_v30 = vmul.f32 %v2031_v46, %v1173_v27  ;;  %vm1200_vm11 = vcmp.eq.f32.partialorder %v1199_v23, 8.507059e+37 }
 0x3b0   :  { %v1206_v22 = vmul.f32 %v1188_v18, %v2859_v0  ;;  %v1193_v45 = vmul.f32 %v2029_v58, %v1192_v6 }
 0x3b2   :  { %v2899_v34 = vadd.f32 %v1207_v30, %v1206_v22  ;;  %v1194_v57 = vadd.f32 %v2029_v58, %v1193_v45 }
 0x3b4   :  { %2032 = vtanh.f32 %v2899_v34  ;;  %v1198_v28 = vsel %vm1197_vm10, %v2029_v58, %v1194_v57 }
 0x3b5   :  { %v1203_v61 = vsel %vm1200_vm11, %v1202_v43, %v1198_v28 }
 0x3ba   :  { %v2033_v17 = vpop.eup %2032 }
 0x3bb   :  { %v1210_v10 = vmul.f32 %v2033_v17, %v1203_v61 }
 0x3bd   :  { %v1215_v31 = vpack.c.bf16 %v1210_v10, %v1210_v10 }
 0x3bf   :  { %1224 = vmatmul.bf16.vlgmr.msra.gmra.mxu0 %v1215_v31  ;;  %1237 = vmatmul.bf16.vlgmr.msra.gmra.mxu1 %v1215_v31 }
 0x3c0   :  { %1250 = vmatmul.bf16.vlgmr.msra.gmra.mxu2 %v1215_v31  ;;  %1263 = vmatmul.bf16.vlgmr.msra.gmra.mxu3 %v1215_v31 }
 0x3c1   :  { %1464 = vmatpush.bf16.msra.mxu0 %v2315_v37  ;;  %1477 = vmatpush.bf16.msra.mxu1 %v2326_v41 }
 0x3c2   :  { %1490 = vmatpush.bf16.msra.mxu2 %v2343_v47  ;;  %1503 = vmatpush.bf16.msra.mxu3 %v2354_v51  ;;  %v2995_v47 = vld [vmem:[#allocation13_spill] sm:$0xff]  ;;  %v2996_v51 = vld [vmem:[#allocation14_spill] sm:$0xff] }
 0x3c5   :  { %1465 = vmatpush.bf16.msra.mxu0 %v2346_v48  ;;  %1478 = vmatpush.bf16.msra.mxu1 %v2360_v53 }
 0x3c6   :  { %1491 = vmatpush.bf16.msra.mxu2 %v2378_v59  ;;  %1504 = vmatpush.bf16.msra.mxu3 %v2390_v63 }
 0x3c9   :  { %1466 = vmatpush.bf16.msra.mxu0 %v2382_v60  ;;  %1479 = vmatpush.bf16.msra.mxu1 %v2396_v1 }
 0x3ca   :  { %1492 = vmatpush.bf16.msra.mxu2 %v2414_v7  ;;  %1505 = vmatpush.bf16.msra.mxu3 %v2426_v11  ;;  %v2997_v7 = vld [vmem:[#allocation15_spill] sm:$0xff] }
 0x3cd   :  { %1467 = vmatpush.bf16.msra.mxu0 %v2418_v8  ;;  %1480 = vmatpush.bf16.msra.mxu1 %v2432_v13 }
 0x3ce   :  { %1493 = vmatpush.bf16.msra.mxu2 %v2453_v20  ;;  %1506 = vmatpush.bf16.msra.mxu3 %v2465_v24 }
 0x3d1   :  { %1468 = vmatpush.bf16.msra.mxu0 %v2457_v21  ;;  %1481 = vmatpush.bf16.msra.mxu1 %v2471_v26 }
 0x3d2   :  { %1494 = vmatpush.bf16.msra.mxu2 %v2489_v32  ;;  %1507 = vmatpush.bf16.msra.mxu3 %v2501_v36 }
 0x3d5   :  { %1469 = vmatpush.bf16.msra.mxu0 %v2493_v33  ;;  %1482 = vmatpush.bf16.msra.mxu1 %v2504_v38 }
 0x3d6   :  { %1495 = vmatpush.bf16.msra.mxu2 %v2507_v39  ;;  %1508 = vmatpush.bf16.msra.mxu3 %v2543_v56 }
 0x3d9   :  { %1470 = vmatpush.bf16.msra.mxu0 %v2520_v44  ;;  %1483 = vmatpush.bf16.msra.mxu1 %v2532_v50  ;;  %v2998_v50 = vld [vmem:[#allocation16_spill] sm:$0xff] }
 0x3da   :  { %1496 = vmatpush.bf16.msra.mxu2 %v2555_v62  ;;  %1509 = vmatpush.bf16.msra.mxu3 %v2567_v4 }
 0x3dd   :  { %1471 = vmatpush.bf16.msra.mxu0 %v2565_v3  ;;  %1484 = vmatpush.bf16.msra.mxu1 %v2576_v9 }
 0x3de   :  { %1497 = vmatpush.bf16.msra.mxu2 %v2585_v14  ;;  %1510 = vmatpush.bf16.msra.mxu3 %v2589_v15 }
 0x43c   :  { %v1225_v37 = vpop.f32.mrf.mxu0  ;;  %v1238_v41 = vpop.f32.mrf.mxu1 }
 0x43d   :  { %v1268_v48 = vadd.f32 %v1225_v37, %v2995_v47  ;;  %v1269_v53 = vadd.f32 %v1238_v41, %v2996_v51  ;;  %v2999_v37 = vld [vmem:[#allocation17_spill] sm:$0xff]  ;;  %v3000_v47 = vld [vmem:[#allocation18_spill] sm:$0xff] }
 0x43f   :  { %v1876_v59 = vmul.f32 -1.442695, %v1268_v48  ;;  %v1877_v60 = vmul.f32 -1.442695, %v1269_v53 }
 0x441   :  { %2034 = vpow2.f32 %v1876_v59 }
 0x442   :  { %2036 = vpow2.f32 %v1877_v60 }
 0x443   :  { %v1251_v63 = vpop.f32.mrf.mxu2  ;;  %v1264_v1 = vpop.f32.mrf.mxu3 }
 0x444   :  { %v1270_v8 = vadd.f32 %v1251_v63, %v2997_v7  ;;  %v1227_v11 = vpop.f32.mrf.mxu0  ;;  %v1240_v13 = vpop.f32.mrf.mxu1  ;;  %v1271_v56 = vadd.f32 %v1264_v1, %v2998_v50  ;;  %v3001_v63 = vld [vmem:[#allocation19_spill] sm:$0xff] }
 0x446   :  { %v1878_v20 = vmul.f32 -1.442695, %v1270_v8 }
 0x447   :  { %v2035_v21 = vpop.eup %2034 }
 0x448   :  { %v2037_v24 = vpop.eup %2036  ;;  %v1281_v26 = vadd.f32 1.0, %v2035_v21  ;;  %2038 = vpow2.f32 %v1878_v20 }
 0x449   :  { %v1282_v32 = vadd.f32 1.0, %v2037_v24 }
 0x44a   :  { %2040 = vrcp.f32 %v1281_v26  ;;  %v1295_v15 = vand.u32 2147483648, %v1281_v26  ;;  %v1293_v35 = vand.u32 2147483647, %v1281_v26  ;;  %vm1289_vm14 = vweird.f32 %v1281_v26 }
 0x44b   :  { %2042 = vrcp.f32 %v1282_v32  ;;  %v1253_v33 = vpop.f32.mrf.mxu2  ;;  %v1266_v36 = vpop.f32.mrf.mxu3  ;;  %v1310_v0 = vand.u32 2147483648, %v1282_v32  ;;  %v1308_v5 = vand.u32 2147483647, %v1282_v32  ;;  %vm1304_vm15 = vweird.f32 %v1282_v32 }
 0x44c   :  { %v1296_v42 = vor.u32 1.1754944e-38, %v1295_v15  ;;  %vm1294_vm2 = vcmp.eq.f32.partialorder %v1293_v35, 8.507059e+37 }
 0x44d   :  { %v1311_v29 = vor.u32 1.1754944e-38, %v1310_v0  ;;  %vm1309_vm3 = vcmp.eq.f32.partialorder %v1308_v5, 8.507059e+37 }
 0x44e   :  { %v2039_v38 = vpop.eup %2038 }
 0x44f   :  { %v1283_v39 = vadd.f32 1.0, %v2039_v38 }
 0x450   :  { %v2041_v44 = vpop.eup %2040 }
 0x451   :  { %v2043_v62 = vpop.eup %2042  ;;  %v1285_v3 = vmul.f32 %v2041_v44, %v1281_v26  ;;  %2044 = vrcp.f32 %v1283_v39  ;;  %vm1290_vm12 = vweird.f32 %v2041_v44  ;;  %v1325_v57 = vand.u32 2147483648, %v1283_v39 }
 0x452   :  { %v1300_v4 = vmul.f32 %v2043_v62, %v1282_v32  ;;  %2046 = vtanh.f32 %v1271_v56  ;;  %vm1305_vm13 = vweird.f32 %v2043_v62  ;;  %vm1291_vm0 = vmor %vm1289_vm14, %vm1290_vm12  ;;  %vm1319_vm5 = vweird.f32 %v1283_v39 }
 0x453   :  { %v1286_v9 = vsub.f32 1.0, %v1285_v3  ;;  %vm1306_vm1 = vmor %vm1304_vm15, %vm1305_vm13  ;;  %v1323_v2 = vand.u32 2147483647, %v1283_v39  ;;  %v1326_v28 = vor.u32 1.1754944e-38, %v1325_v57 }
 0x454   :  { %v1301_v14 = vsub.f32 1.0, %v1300_v4 }
 0x455   :  { %v1287_v54 = vmul.f32 %v2041_v44, %v1286_v9  ;;  %vm1324_vm7 = vcmp.eq.f32.partialorder %v1323_v2, 8.507059e+37 }
 0x456   :  { %v1302_v49 = vmul.f32 %v2043_v62, %v1301_v14 }
 0x457   :  { %v2045_v19 = vpop.eup %2044  ;;  %v1288_v55 = vadd.f32 %v2041_v44, %v1287_v54 }
 0x458   :  { %v1315_v58 = vmul.f32 %v2045_v19, %v1283_v39  ;;  %v1303_v12 = vadd.f32 %v2043_v62, %v1302_v49  ;;  %v2047_v52 = vpop.eup %2046  ;;  %vm1320_vm4 = vweird.f32 %v2045_v19  ;;  %v3002_v39 = vld [vmem:[#allocation20_spill] sm:$0xff] }
 0x459   :  { %v1292_v40 = vsel %vm1291_vm0, %v2041_v44, %v1288_v55  ;;  %vm1321_vm6 = vmor %vm1319_vm5, %vm1320_vm4 }
 0x45a   :  { %v1316_v25 = vsub.f32 1.0, %v1315_v58  ;;  %v1297_v46 = vsel %vm1294_vm2, %v1296_v42, %v1292_v40  ;;  %v1307_v6 = vsel %vm1306_vm1, %v2043_v62, %v1303_v12 }
 0x45b   :  { %v1312_v27 = vsel %vm1309_vm3, %v1311_v29, %v1307_v6  ;;  %v1331_v16 = vmul.f32 %v2047_v52, %v1297_v46 }
 0x45c   :  { %v1330_v18 = vmul.f32 %v1312_v27, %v2899_v34  ;;  %v1317_v30 = vmul.f32 %v2045_v19, %v1316_v25 }
 0x45e   :  { %v2939_v22 = vadd.f32 %v1331_v16, %v1330_v18  ;;  %v1318_v45 = vadd.f32 %v2045_v19, %v1317_v30 }
 0x460   :  { %2048 = vtanh.f32 %v2939_v22  ;;  %v1322_v23 = vsel %vm1321_vm6, %v2045_v19, %v1318_v45 }
 0x461   :  { %v1327_v17 = vsel %vm1324_vm7, %v1326_v28, %v1322_v23 }
 0x466   :  { %v2049_v43 = vpop.eup %2048 }
 0x467   :  { %v1334_v61 = vmul.f32 %v2049_v43, %v1327_v17 }
 0x469   :  { %v1339_v10 = vpack.c.bf16 %v1334_v61, %v1334_v61 }
 0x46b   :  { %1348 = vmatmul.bf16.vlgmr.msrb.gmra.mxu0 %v1339_v10  ;;  %1361 = vmatmul.bf16.vlgmr.msrb.gmra.mxu1 %v1339_v10 }
 0x46c   :  { %1374 = vmatmul.bf16.vlgmr.msrb.gmra.mxu2 %v1339_v10  ;;  %1387 = vmatmul.bf16.vlgmr.msrb.gmra.mxu3 %v1339_v10 }
 0x4e8   :  { %v1349_v34 = vpop.f32.mrf.mxu0  ;;  %v1362_v31 = vpop.f32.mrf.mxu1 }
 0x4e9   :  { %v1392_v41 = vadd.f32 %v1349_v34, %v2999_v37  ;;  %v1393_v48 = vadd.f32 %v1362_v31, %v3000_v47  ;;  %v3003_v34 = vld [vmem:[#allocation21_spill] sm:$0xff]  ;;  %v3004_v37 = vld [vmem:[#allocation22_spill] sm:$0xff] }
 0x4eb   :  { %v1879_v51 = vmul.f32 -1.442695, %v1392_v41  ;;  %v1880_v53 = vmul.f32 -1.442695, %v1393_v48 }
 0x4ed   :  { %2050 = vpow2.f32 %v1879_v51 }
 0x4ee   :  { %2052 = vpow2.f32 %v1880_v53 }
 0x4ef   :  { %v1375_v59 = vpop.f32.mrf.mxu2  ;;  %v1388_v60 = vpop.f32.mrf.mxu3 }
 0x4f0   :  { %v1394_v1 = vadd.f32 %v1375_v59, %v3001_v63  ;;  %v1351_v7 = vpop.f32.mrf.mxu0  ;;  %v1364_v8 = vpop.f32.mrf.mxu1  ;;  %v1395_v44 = vadd.f32 %v1388_v60, %v3002_v39  ;;  %v3005_v59 = vld [vmem:[#allocation23_spill] sm:$0xff] }
 0x4f2   :  { %v1881_v11 = vmul.f32 -1.442695, %v1394_v1 }
 0x4f3   :  { %v2051_v13 = vpop.eup %2050 }
 0x4f4   :  { %v2053_v20 = vpop.eup %2052  ;;  %v1405_v21 = vadd.f32 1.0, %v2051_v13  ;;  %2054 = vpow2.f32 %v1881_v11 }
 0x4f5   :  { %v1406_v24 = vadd.f32 1.0, %v2053_v20 }
 0x4f6   :  { %2056 = vrcp.f32 %v1405_v21  ;;  %v1419_v9 = vand.u32 2147483648, %v1405_v21  ;;  %v1417_v0 = vand.u32 2147483647, %v1405_v21  ;;  %vm1413_vm10 = vweird.f32 %v1405_v21 }
 0x4f7   :  { %2058 = vrcp.f32 %v1406_v24  ;;  %v1377_v26 = vpop.f32.mrf.mxu2  ;;  %v1390_v32 = vpop.f32.mrf.mxu3  ;;  %v1434_v14 = vand.u32 2147483648, %v1406_v24  ;;  %v1432_v35 = vand.u32 2147483647, %v1406_v24  ;;  %vm1428_vm11 = vweird.f32 %v1406_v24 }
 0x4f8   :  { %v1420_v55 = vor.u32 1.1754944e-38, %v1419_v9  ;;  %vm1418_vm14 = vcmp.eq.f32.partialorder %v1417_v0, 8.507059e+37 }
 0x4f9   :  { %v1435_v42 = vor.u32 1.1754944e-38, %v1434_v14  ;;  %vm1433_vm15 = vcmp.eq.f32.partialorder %v1432_v35, 8.507059e+37 }
 0x4fa   :  { %v2055_v33 = vpop.eup %2054 }
 0x4fb   :  { %v1407_v36 = vadd.f32 1.0, %v2055_v33 }
 0x4fc   :  { %v2057_v38 = vpop.eup %2056 }
 0x4fd   :  { %v2059_v50 = vpop.eup %2058  ;;  %v1409_v56 = vmul.f32 %v2057_v38, %v1405_v21  ;;  %2060 = vrcp.f32 %v1407_v36  ;;  %vm1414_vm8 = vweird.f32 %v2057_v38  ;;  %v1449_v45 = vand.u32 2147483648, %v1407_v36 }
 0x4fe   :  { %v1424_v62 = vmul.f32 %v2059_v50, %v1406_v24  ;;  %2062 = vtanh.f32 %v1395_v44  ;;  %vm1429_vm9 = vweird.f32 %v2059_v50  ;;  %vm1415_vm12 = vmor %vm1413_vm10, %vm1414_vm8  ;;  %vm1443_vm1 = vweird.f32 %v1407_v36 }
 0x4ff   :  { %v1410_v3 = vsub.f32 1.0, %v1409_v56  ;;  %vm1430_vm13 = vmor %vm1428_vm11, %vm1429_vm9  ;;  %v1447_v57 = vand.u32 2147483647, %v1407_v36  ;;  %v1450_v23 = vor.u32 1.1754944e-38, %v1449_v45 }
 0x500   :  { %v1425_v4 = vsub.f32 1.0, %v1424_v62 }
 0x501   :  { %v1411_v15 = vmul.f32 %v2057_v38, %v1410_v3  ;;  %vm1448_vm3 = vcmp.eq.f32.partialorder %v1447_v57, 8.507059e+37 }
 0x502   :  { %v1426_v54 = vmul.f32 %v2059_v50, %v1425_v4 }
 0x503   :  { %v2061_v49 = vpop.eup %2060  ;;  %v1412_v5 = vadd.f32 %v2057_v38, %v1411_v15 }
 0x504   :  { %v1439_v19 = vmul.f32 %v2061_v49, %v1407_v36  ;;  %v1427_v58 = vadd.f32 %v2059_v50, %v1426_v54  ;;  %v2063_v29 = vpop.eup %2062  ;;  %vm1444_vm0 = vweird.f32 %v2061_v49  ;;  %v3006_v36 = vld [vmem:[#allocation24_spill] sm:$0xff] }
 0x505   :  { %v1416_v12 = vsel %vm1415_vm12, %v2057_v38, %v1412_v5  ;;  %vm1445_vm2 = vmor %vm1443_vm1, %vm1444_vm0 }
 0x506   :  { %v1440_v40 = vsub.f32 1.0, %v1439_v19  ;;  %v1421_v52 = vsel %vm1418_vm14, %v1420_v55, %v1416_v12  ;;  %v1431_v25 = vsel %vm1430_vm13, %v2059_v50, %v1427_v58 }
 0x507   :  { %v1436_v46 = vsel %vm1433_vm15, %v1435_v42, %v1431_v25  ;;  %v1455_v6 = vmul.f32 %v2063_v29, %v1421_v52 }
 0x508   :  { %v1454_v27 = vmul.f32 %v1436_v46, %v2939_v22  ;;  %v1441_v16 = vmul.f32 %v2061_v49, %v1440_v40 }
 0x50a   :  { %v2947_v18 = vadd.f32 %v1455_v6, %v1454_v27  ;;  %v1442_v30 = vadd.f32 %v2061_v49, %v1441_v16 }
 0x50c   :  { %2064 = vtanh.f32 %v2947_v18  ;;  %v1446_v2 = vsel %vm1445_vm2, %v2061_v49, %v1442_v30 }
 0x50d   :  { %v1451_v43 = vsel %vm1448_vm3, %v1450_v23, %v1446_v2 }
 0x512   :  { %v2065_v28 = vpop.eup %2064 }
 0x513   :  { %v1458_v17 = vmul.f32 %v2065_v28, %v1451_v43 }
 0x515   :  { %v1463_v61 = vpack.c.bf16 %v1458_v17, %v1458_v17 }
 0x517   :  { %1472 = vmatmul.bf16.vlgmr.msra.gmra.mxu0 %v1463_v61  ;;  %1485 = vmatmul.bf16.vlgmr.msra.gmra.mxu1 %v1463_v61 }
 0x518   :  { %1498 = vmatmul.bf16.vlgmr.msra.gmra.mxu2 %v1463_v61  ;;  %1511 = vmatmul.bf16.vlgmr.msra.gmra.mxu3 %v1463_v61 }
 0x594   :  { %v1473_v22 = vpop.f32.mrf.mxu0  ;;  %v1486_v10 = vpop.f32.mrf.mxu1 }
 0x595   :  { %v1516_v31 = vadd.f32 %v1473_v22, %v3003_v34  ;;  %v1517_v41 = vadd.f32 %v1486_v10, %v3004_v37 }
 0x597   :  { %v1882_v47 = vmul.f32 -1.442695, %v1516_v31  ;;  %v1883_v48 = vmul.f32 -1.442695, %v1517_v41 }
 0x599   :  { %2066 = vpow2.f32 %v1882_v47 }
 0x59a   :  { %2068 = vpow2.f32 %v1883_v48 }
 0x59b   :  { %v1499_v51 = vpop.f32.mrf.mxu2  ;;  %v1512_v53 = vpop.f32.mrf.mxu3 }
 0x59c   :  { %v1518_v60 = vadd.f32 %v1499_v51, %v3005_v59  ;;  %v1475_v63 = vpop.f32.mrf.mxu0  ;;  %v1488_v1 = vpop.f32.mrf.mxu1  ;;  %v1519_v38 = vadd.f32 %v1512_v53, %v3006_v36 }
 0x59e   :  { %v1884_v7 = vmul.f32 -1.442695, %v1518_v60 }
 0x59f   :  { %v2067_v8 = vpop.eup %2066 }
 0x5a0   :  { %v2069_v11 = vpop.eup %2068  ;;  %v1529_v13 = vadd.f32 1.0, %v2067_v8  ;;  %2070 = vpow2.f32 %v1884_v7 }
 0x5a1   :  { %v1530_v20 = vadd.f32 1.0, %v2069_v11 }
 0x5a2   :  { %2072 = vrcp.f32 %v1529_v13  ;;  %v1543_v3 = vand.u32 2147483648, %v1529_v13  ;;  %v1541_v14 = vand.u32 2147483647, %v1529_v13  ;;  %vm1537_vm6 = vweird.f32 %v1529_v13 }
 0x5a3   :  { %2074 = vrcp.f32 %v1530_v20  ;;  %v1501_v21 = vpop.f32.mrf.mxu2  ;;  %v1514_v24 = vpop.f32.mrf.mxu3  ;;  %v1558_v4 = vand.u32 2147483648, %v1530_v20  ;;  %v1556_v0 = vand.u32 2147483647, %v1530_v20  ;;  %vm1552_vm7 = vweird.f32 %v1530_v20 }
 0x5a4   :  { %v1544_v5 = vor.u32 1.1754944e-38, %v1543_v3  ;;  %vm1542_vm10 = vcmp.eq.f32.partialorder %v1541_v14, 8.507059e+37 }
 0x5a5   :  { %v1559_v55 = vor.u32 1.1754944e-38, %v1558_v4  ;;  %vm1557_vm11 = vcmp.eq.f32.partialorder %v1556_v0, 8.507059e+37 }
 0x5a6   :  { %v2071_v26 = vpop.eup %2070 }
 0x5a7   :  { %v1531_v32 = vadd.f32 1.0, %v2071_v26 }
 0x5a8   :  { %v2073_v33 = vpop.eup %2072 }
 0x5a9   :  { %v2075_v39 = vpop.eup %2074  ;;  %v1533_v44 = vmul.f32 %v2073_v33, %v1529_v13  ;;  %2076 = vrcp.f32 %v1531_v32  ;;  %vm1538_vm4 = vweird.f32 %v2073_v33  ;;  %v1573_v30 = vand.u32 2147483648, %v1531_v32 }
 0x5aa   :  { %v1548_v50 = vmul.f32 %v2075_v39, %v1530_v20  ;;  %2078 = vtanh.f32 %v1519_v38  ;;  %vm1553_vm5 = vweird.f32 %v2075_v39  ;;  %vm1539_vm8 = vmor %vm1537_vm6, %vm1538_vm4  ;;  %vm1567_vm13 = vweird.f32 %v1531_v32 }
 0x5ab   :  { %v1534_v56 = vsub.f32 1.0, %v1533_v44  ;;  %vm1554_vm9 = vmor %vm1552_vm7, %vm1553_vm5  ;;  %v1571_v45 = vand.u32 2147483647, %v1531_v32  ;;  %v1574_v2 = vor.u32 1.1754944e-38, %v1573_v30 }
 0x5ac   :  { %v1549_v62 = vsub.f32 1.0, %v1548_v50 }
 0x5ad   :  { %v1535_v9 = vmul.f32 %v2073_v33, %v1534_v56  ;;  %vm1572_vm15 = vcmp.eq.f32.partialorder %v1571_v45, 8.507059e+37 }
 0x5ae   :  { %v1550_v15 = vmul.f32 %v2075_v39, %v1549_v62 }
 0x5af   :  { %v2077_v54 = vpop.eup %2076  ;;  %v1536_v35 = vadd.f32 %v2073_v33, %v1535_v9 }
 0x5b0   :  { %v1563_v49 = vmul.f32 %v2077_v54, %v1531_v32  ;;  %v1551_v19 = vadd.f32 %v2075_v39, %v1550_v15  ;;  %v2079_v42 = vpop.eup %2078  ;;  %vm1568_vm12 = vweird.f32 %v2077_v54 }
 0x5b1   :  { %v1540_v58 = vsel %vm1539_vm8, %v2073_v33, %v1536_v35  ;;  %vm1569_vm14 = vmor %vm1567_vm13, %vm1568_vm12 }
 0x5b2   :  { %v1564_v12 = vsub.f32 1.0, %v1563_v49  ;;  %v1545_v29 = vsel %vm1542_vm10, %v1544_v5, %v1540_v58  ;;  %v1555_v40 = vsel %vm1554_vm9, %v2075_v39, %v1551_v19 }
 0x5b3   :  { %v1560_v52 = vsel %vm1557_vm11, %v1559_v55, %v1555_v40  ;;  %v1579_v25 = vmul.f32 %v2079_v42, %v1545_v29 }
 0x5b4   :  { %v1565_v46 = vmul.f32 %v2077_v54, %v1564_v12  ;;  %v1578_v6 = vmul.f32 %v1560_v52, %v2947_v18 }
 0x5b6   :  { %v1580_v27 = vadd.f32 %v1579_v25, %v1578_v6  ;;  %v1566_v16 = vadd.f32 %v2077_v54, %v1565_v46 }
 0x5b8   :  { %2080 = vtanh.f32 %v1580_v27  ;;  %v1570_v57 = vsel %vm1569_vm14, %v2077_v54, %v1566_v16 }
 0x5b9   :  { %v1575_v28 = vsel %vm1572_vm15, %v1574_v2, %v1570_v57 }
 0x5be   :  { %v2081_v23 = vpop.eup %2080 }
 0x5bf   :  { %v1582_v43 = vmul.f32 %v2081_v23, %v1575_v28 }
 0x5c1   :  { %v1583_v17 = vpack.c.bf16 %v1582_v43, %v1582_v43 }
 0x5c3   :  { %1584 = vst [vmem:[%s2962_s4] sm:$0xf] %v1583_v17 }

</bundles_post_ra>
